<compile_context>
chip_gen: v7x
topology: tpu7x:2x2x1
jax: 0.10.0
libtpu: 0.0.40
codegen_flags: <defaults>
</compile_context>

<pallas_src>
import functools

import jax
import jax.numpy as jnp
from jax.experimental import pallas as pl
from jax.experimental.pallas import tpu as pltpu

_MIB = 1024 * 1024


def _vmem_limit_bytes():
    """~3/4 of physical VMEM: ~48 MiB on v7x, ~96 MiB on v5e/v6e, with clamps."""
    cap = 64 * _MIB
    try:
        cap = int(getattr(pltpu.get_tpu_info(), "vmem_capacity_bytes", cap)) or cap
    except Exception:
        pass
    return max(32 * _MIB, min((cap * 3) // 4, 112 * _MIB))


# --------------------------------------------------------------------------- #
# Fused BasicBlock kernel (one grid step = one image)
# --------------------------------------------------------------------------- #
def _basic_block_kernel(*refs, taps1, Ho, Wo, cin, cout, has_ds):
    if has_ds:
        (x_ref, w1_ref, b1_ref, w2_ref, b2_ref,
         r_ref, wd_ref, bd_ref, o_ref, h1pad_ref) = refs
    else:
        (x_ref, w1_ref, b1_ref, w2_ref, b2_ref,
         r_ref, o_ref, h1pad_ref) = refs

    M = Ho * Wo

    # ---- conv1 + bn1 + ReLU : implicit GEMM over 9 statically shifted taps ----
    acc1 = jnp.zeros((M, cout), jnp.float32)
    for t, (ph, dy, dx) in enumerate(taps1):
        xs = x_ref[ph, dy:dy + Ho, dx:dx + Wo, :].reshape(M, cin)
        acc1 = acc1 + jnp.dot(xs, w1_ref[t], preferred_element_type=jnp.float32)
    h1 = jnp.maximum(acc1 + b1_ref[...], 0.0).astype(jnp.bfloat16)

    # Stage h1 with a one-pixel zero halo in VMEM so conv2 never touches HBM.
    # Zeroed every step: with "parallel" megacore sharding a core may never see
    # program_id == 0, so a pl.when(first)-style init would be unsafe.
    h1pad_ref[...] = jnp.zeros_like(h1pad_ref)
    h1pad_ref[1:1 + Ho, 1:1 + Wo, :] = h1.reshape(Ho, Wo, cout)

    # ---- conv2 + bn2 : implicit GEMM straight from the VMEM staging buffer ----
    acc2 = jnp.zeros((M, cout), jnp.float32)
    t2 = 0
    for dy in range(3):
        for dx in range(3):
            hs = h1pad_ref[dy:dy + Ho, dx:dx + Wo, :].reshape(M, cout)
            acc2 = acc2 + jnp.dot(hs, w2_ref[t2], preferred_element_type=jnp.float32)
            t2 += 1
    acc2 = acc2 + b2_ref[...]

    # ---- residual: fused 1x1(+BN) downsample matmul, or plain identity add ----
    if has_ds:
        rs = r_ref[0].reshape(M, cin)
        acc2 = acc2 + jnp.dot(rs, wd_ref[0], preferred_element_type=jnp.float32)
        acc2 = acc2 + bd_ref[...]
    else:
        acc2 = acc2 + r_ref[0].reshape(M, cout).astype(jnp.float32)

    o_ref[...] = jnp.maximum(acc2, 0.0).reshape(1, Ho, Wo, cout).astype(o_ref.dtype)


# --------------------------------------------------------------------------- #
# Host-side glue
# --------------------------------------------------------------------------- #
def _space_to_depth2(xp):
    """(N, Hp, Wp, C) -> (N*4, ceil(Hp/2), ceil(Wp/2), C); phase p*2+q holds xp[2a+p, 2b+q]."""
    n, hp, wp, c = xp.shape
    he, we = ((hp + 1) // 2) * 2, ((wp + 1) // 2) * 2
    xp = jnp.pad(xp, ((0, 0), (0, he - hp), (0, we - wp), (0, 0)))
    x = xp.reshape(n, he // 2, 2, we // 2, 2, c)
    x = jnp.transpose(x, (0, 2, 4, 1, 3, 5))
    return x.reshape(n * 4, he // 2, we // 2, c)


def basic_block_forward(x_nhwc, p):
    """One fused BasicBlock: relu(bn2(conv2(relu(bn1(conv1(x))))) + downsample(x))."""
    n, h, w, cin = x_nhwc.shape
    stride, cout = p["stride"], p["cout"]
    assert stride in (1, 2)
    ho = (h - 1) // stride + 1
    wo = (w - 1) // stride + 1

    # conv pad=1 halo: a cheap 1x copy (NOT a 9x im2col).
    xp = jnp.pad(x_nhwc, ((0, 0), (1, 1), (1, 1), (0, 0)))
    if stride == 2:
        x_arr = _space_to_depth2(xp)           # (N*4, Hs, Ws, Cin), same byte count as input
        taps1 = tuple(((di % 2) * 2 + dj % 2, di // 2, dj // 2)
                      for di in range(3) for dj in range(3))
    else:
        x_arr = xp                              # (N, H+2, W+2, Cin)
        taps1 = tuple((0, di, dj) for di in range(3) for dj in range(3))
    phases = x_arr.shape[0] // n
    hi, wi = x_arr.shape[1], x_arr.shape[2]

    has_ds = p["wd"] is not None
    # Residual source: strided view of x for the 1x1 downsample (no patch matrix),
    # or x itself for the identity path.
    r = x_nhwc[:, ::stride, ::stride, :] if has_ds else x_nhwc
    cr = r.shape[-1]

    args = [x_arr, p["w1"], p["b1"], p["w2"], p["b2"], r]
    in_specs = [
        pl.BlockSpec((phases, hi, wi, cin), lambda i: (i, 0, 0, 0)),
        pl.BlockSpec((9, cin, cout), lambda i: (0, 0, 0)),        # VMEM-resident weights
        pl.BlockSpec((1, cout), lambda i: (0, 0)),
        pl.BlockSpec((9, cout, cout), lambda i: (0, 0, 0)),       # VMEM-resident weights
        pl.BlockSpec((1, cout), lambda i: (0, 0)),
        pl.BlockSpec((1, ho, wo, cr), lambda i: (i, 0, 0, 0)),
    ]
    if has_ds:
        args += [p["wd"], p["bd"]]
        in_specs += [
            pl.BlockSpec((1, cin, cout), lambda i: (0, 0, 0)),
            pl.BlockSpec((1, cout), lambda i: (0, 0)),
        ]

    kernel = functools.partial(
        _basic_block_kernel, taps1=taps1, Ho=ho, Wo=wo,
        cin=cin, cout=cout, has_ds=has_ds)

    m = ho * wo
    flops = 2 * n * m * cout * (9 * cin + 9 * cout + (cin if has_ds else 0))
    bytes_accessed = 2 * (x_arr.size + r.size + n * m * cout
                          + p["w1"].size + p["w2"].size
                          + (p["wd"].size if has_ds else 0)) \
                     + 4 * (p["b1"].size + p["b2"].size
                            + (p["bd"].size if has_ds else 0))
    cost = pl.CostEstimate(flops=int(flops), transcendentals=0,
                           bytes_accessed=int(bytes_accessed))

    return pl.pallas_call(
        kernel,
        out_shape=jax.ShapeDtypeStruct((n, ho, wo, cout), jnp.bfloat16),
        grid_spec=pltpu.PrefetchScalarGridSpec(
            num_scalar_prefetch=0,
            grid=(n,),
            in_specs=in_specs,
            out_specs=pl.BlockSpec((1, ho, wo, cout), lambda i: (i, 0, 0, 0)),
            scratch_shapes=[pltpu.VMEM((ho + 2, wo + 2, cout), jnp.bfloat16)],
        ),
        compiler_params=pltpu.CompilerParams(
            dimension_semantics=("parallel",),
            vmem_limit_bytes=_vmem_limit_bytes(),
        ),
        cost_estimate=cost,
    )(*args)


def encoder_block_forward(x_nchw, params_list):
    """Matches PyTorch EncoderBlock.forward: returns (blocks(x), x)."""
    h = jnp.transpose(x_nchw, (0, 2, 3, 1)).astype(jnp.bfloat16)
    for p in params_list:
        h = basic_block_forward(h, p)
    out_nchw = jnp.transpose(h, (0, 3, 1, 2)).astype(jnp.float32)
    return out_nchw, x_nchw


# --------------------------------------------------------------------------- #
# Parameters (BN folded into conv weights; inference-mode running stats)
# --------------------------------------------------------------------------- #
def _make_bn_params(cout, eps=1e-5):
    gamma = jnp.ones((cout,), jnp.float32)
    beta = jnp.zeros((cout,), jnp.float32)
    running_mean = jnp.zeros((cout,), jnp.float32)
    running_var = jnp.ones((cout,), jnp.float32)
    scale = gamma * jax.lax.rsqrt(running_var + eps)
    bias = (beta - running_mean * scale).reshape(1, cout)
    return scale, bias


def _conv_w_to_taps(w_oihw):
    # PyTorch (Cout, Cin, kh, kw) -> (kh*kw, Cin, Cout), taps ordered di-major/dj-minor.
    cout, cin, kh, kw = w_oihw.shape
    return jnp.transpose(w_oihw, (2, 3, 1, 0)).reshape(kh * kw, cin, cout)


def make_basic_block_params(key, cin, cout, stride):
    k1, k2, k3 = jax.random.split(key, 3)
    p = {"stride": stride, "cin": cin, "cout": cout}

    s1, b1 = _make_bn_params(cout)
    p["w1"] = (_conv_w_to_taps(0.1 * jax.random.normal(k1, (cout, cin, 3, 3), jnp.float32))
               * s1).astype(jnp.bfloat16)          # BN scale folded into conv weights
    p["b1"] = b1

    s2, b2 = _make_bn_params(cout)
    p["w2"] = (_conv_w_to_taps(0.1 * jax.random.normal(k2, (cout, cout, 3, 3), jnp.float32))
               * s2).astype(jnp.bfloat16)
    p["b2"] = b2

    if stride != 1 or cin != cout:
        sd, bd = _make_bn_params(cout)
        p["wd"] = (_conv_w_to_taps(0.1 * jax.random.normal(k3, (cout, cin, 1, 1), jnp.float32))
                   * sd).astype(jnp.bfloat16)
        p["bd"] = bd
    else:
        p["wd"], p["bd"] = None, None
    return p


# --------------------------------------------------------------------------- #
# Pure-JAX reference (XLA conv) with the same bf16 staging points as the kernel
# --------------------------------------------------------------------------- #
def _conv_ref(x, w_taps, k, stride, pad):
    cin, cout = w_taps.shape[-2], w_taps.shape[-1]
    w = w_taps.astype(jnp.float32).reshape(k, k, cin, cout)          # HWIO
    return jax.lax.conv_general_dilated(
        x, w, window_strides=(stride, stride),
        padding=((pad, pad), (pad, pad)),
        dimension_numbers=("NHWC", "HWIO", "NHWC"),
        precision=jax.lax.Precision.HIGHEST)


def encoder_block_reference(x_nchw, params_list):
    h = jnp.transpose(x_nchw, (0, 2, 3, 1)).astype(jnp.bfloat16).astype(jnp.float32)
    for p in params_list:
        stride = p["stride"]
        h1 = jnp.maximum(_conv_ref(h, p["w1"], 3, stride, 1) + p["b1"], 0.0)
        h1 = h1.astype(jnp.bfloat16).astype(jnp.float32)
        h2 = _conv_ref(h1, p["w2"], 3, 1, 1) + p["b2"]
        if p["wd"] is not None:
            iden = _conv_ref(h, p["wd"], 1, stride, 0) + p["bd"]
        else:
            iden = h
        h = jnp.maximum(h2 + iden, 0.0).astype(jnp.bfloat16).astype(jnp.float32)
    return jnp.transpose(h, (0, 3, 1, 2))


# --------------------------------------------------------------------------- #
if __name__ == "__main__":
    key = jax.random.PRNGKey(0)
    kx, kp = jax.random.split(key)

    N, Cin, H, W = 2, 4, 16, 16
    Cout, n_blocks = 8, 2

    x = jax.random.normal(kx, (N, Cin, H, W), jnp.float32)

    keys = jax.random.split(kp, n_blocks)
    params = [make_basic_block_params(keys[0], Cin, Cout, stride=2)]
    for i in range(1, n_blocks):
        params.append(make_basic_block_params(keys[i], Cout, Cout, stride=1))

    out, x_skip = encoder_block_forward(x, params)
    jax.block_until_ready(out)
    jax.block_until_ready(x_skip)

    assert out.shape == (N, Cout, H // 2, W // 2), out.shape
    assert x_skip.shape == (N, Cin, H, W), x_skip.shape
    assert bool(jnp.all(jnp.isfinite(out)))

    # Explicit tolerance check vs a pure-JAX reference (review: bf16 numerics
    # should be covered by a tolerance test, not only isfinite).
    ref = encoder_block_reference(x, params)
    assert bool(jnp.allclose(out, ref, rtol=2e-2, atol=2e-2)), \
        f"max abs err {float(jnp.max(jnp.abs(out - ref)))}"

    print("KERNEL_OK")
</pallas_src>

<mosaic_0001>
module attributes {stable_mosaic.version = 11 : i64} {
  func.func @_basic_block_kernel(%arg0: i32, %arg1: memref<4x9x9x4xbf16, #tpu.memory_space<vmem>>, %arg2: memref<9x4x8xbf16, #tpu.memory_space<vmem>>, %arg3: memref<1x8xf32, #tpu.memory_space<vmem>>, %arg4: memref<9x8x8xbf16, #tpu.memory_space<vmem>>, %arg5: memref<1x8xf32, #tpu.memory_space<vmem>>, %arg6: memref<1x8x8x4xbf16, #tpu.memory_space<vmem>>, %arg7: memref<1x4x8xbf16, #tpu.memory_space<vmem>>, %arg8: memref<1x8xf32, #tpu.memory_space<vmem>>, %arg9: memref<1x8x8x8xbf16, #tpu.memory_space<vmem>>, %arg10: memref<10x10x8xbf16, #tpu.memory_space<vmem>>) attributes {dimension_semantics = [#tpu.dimension_semantics<parallel>], iteration_bounds = array<i64: 2>, scalar_prefetch = 0 : i64, scratch_operands = 1 : i64, tpu.core_type = #tpu.core_type<tc>, window_params = [{transform_indices = @transform_0, window_bounds = array<i64: 4, 9, 9, 4>}, {pipeline_mode = #tpu.pipeline_mode<synchronous>, transform_indices = @transform_1, window_bounds = array<i64: 9, 4, 8>}, {pipeline_mode = #tpu.pipeline_mode<synchronous>, transform_indices = @transform_2, window_bounds = array<i64: 1, 8>}, {pipeline_mode = #tpu.pipeline_mode<synchronous>, transform_indices = @transform_3, window_bounds = array<i64: 9, 8, 8>}, {pipeline_mode = #tpu.pipeline_mode<synchronous>, transform_indices = @transform_4, window_bounds = array<i64: 1, 8>}, {transform_indices = @transform_5, window_bounds = array<i64: 1, 8, 8, 4>}, {pipeline_mode = #tpu.pipeline_mode<synchronous>, transform_indices = @transform_6, window_bounds = array<i64: 1, 4, 8>}, {pipeline_mode = #tpu.pipeline_mode<synchronous>, transform_indices = @transform_7, window_bounds = array<i64: 1, 8>}, {transform_indices = @transform_8, window_bounds = array<i64: 1, 8, 8, 8>}]} {
    %cst = arith.constant 0.000000e+00 : f32
    %0 = vector.broadcast %cst : f32 to vector<64x8xf32>
    %c0 = arith.constant 0 : index
    %c0_0 = arith.constant 0 : index
    %c0_1 = arith.constant 0 : index
    %c0_2 = arith.constant 0 : index
    %1 = vector.load %arg1[%c0, %c0_0, %c0_1, %c0_2] : memref<4x9x9x4xbf16, #tpu.memory_space<vmem>>, vector<1x8x8x4xbf16>
    %2 = vector.shape_cast %1 : vector<1x8x8x4xbf16> to vector<8x8x4xbf16>
    %3 = vector.shape_cast %2 : vector<8x8x4xbf16> to vector<64x4xbf16>
    %c0_3 = arith.constant 0 : index
    %c0_4 = arith.constant 0 : index
    %c0_5 = arith.constant 0 : index
    %4 = vector.load %arg2[%c0_3, %c0_4, %c0_5] : memref<9x4x8xbf16, #tpu.memory_space<vmem>>, vector<1x4x8xbf16>
    %5 = vector.shape_cast %4 : vector<1x4x8xbf16> to vector<4x8xbf16>
    %cst_6 = arith.constant dense<0.000000e+00> : vector<64x8xf32>
    %6 = tpu.matmul %3, %5, %cst_6 {dimension_numbers = #tpu.dot_dimension_numbers<[1], [0], [0], [1], [0, 0, 1, 1], [], []>} : vector<64x4xbf16>, vector<4x8xbf16>, vector<64x8xf32> -> vector<64x8xf32>
    %7 = arith.addf %0, %6 : vector<64x8xf32>
    %c1 = arith.constant 1 : index
    %c0_7 = arith.constant 0 : index
    %c0_8 = arith.constant 0 : index
    %c0_9 = arith.constant 0 : index
    %8 = vector.load %arg1[%c1, %c0_7, %c0_8, %c0_9] : memref<4x9x9x4xbf16, #tpu.memory_space<vmem>>, vector<1x8x8x4xbf16>
    %9 = vector.shape_cast %8 : vector<1x8x8x4xbf16> to vector<8x8x4xbf16>
    %10 = vector.shape_cast %9 : vector<8x8x4xbf16> to vector<64x4xbf16>
    %c1_10 = arith.constant 1 : index
    %c0_11 = arith.constant 0 : index
    %c0_12 = arith.constant 0 : index
    %11 = vector.load %arg2[%c1_10, %c0_11, %c0_12] : memref<9x4x8xbf16, #tpu.memory_space<vmem>>, vector<1x4x8xbf16>
    %12 = vector.shape_cast %11 : vector<1x4x8xbf16> to vector<4x8xbf16>
    %cst_13 = arith.constant dense<0.000000e+00> : vector<64x8xf32>
    %13 = tpu.matmul %10, %12, %cst_13 {dimension_numbers = #tpu.dot_dimension_numbers<[1], [0], [0], [1], [0, 0, 1, 1], [], []>} : vector<64x4xbf16>, vector<4x8xbf16>, vector<64x8xf32> -> vector<64x8xf32>
    %14 = arith.addf %7, %13 : vector<64x8xf32>
    %c0_14 = arith.constant 0 : index
    %c0_15 = arith.constant 0 : index
    %c1_16 = arith.constant 1 : index
    %c0_17 = arith.constant 0 : index
    %15 = vector.load %arg1[%c0_14, %c0_15, %c1_16, %c0_17] : memref<4x9x9x4xbf16, #tpu.memory_space<vmem>>, vector<1x8x8x4xbf16>
    %16 = vector.shape_cast %15 : vector<1x8x8x4xbf16> to vector<8x8x4xbf16>
    %17 = vector.shape_cast %16 : vector<8x8x4xbf16> to vector<64x4xbf16>
    %c2 = arith.constant 2 : index
    %c0_18 = arith.constant 0 : index
    %c0_19 = arith.constant 0 : index
    %18 = vector.load %arg2[%c2, %c0_18, %c0_19] : memref<9x4x8xbf16, #tpu.memory_space<vmem>>, vector<1x4x8xbf16>
    %19 = vector.shape_cast %18 : vector<1x4x8xbf16> to vector<4x8xbf16>
    %cst_20 = arith.constant dense<0.000000e+00> : vector<64x8xf32>
    %20 = tpu.matmul %17, %19, %cst_20 {dimension_numbers = #tpu.dot_dimension_numbers<[1], [0], [0], [1], [0, 0, 1, 1], [], []>} : vector<64x4xbf16>, vector<4x8xbf16>, vector<64x8xf32> -> vector<64x8xf32>
    %21 = arith.addf %14, %20 : vector<64x8xf32>
    %c2_21 = arith.constant 2 : index
    %c0_22 = arith.constant 0 : index
    %c0_23 = arith.constant 0 : index
    %c0_24 = arith.constant 0 : index
    %22 = vector.load %arg1[%c2_21, %c0_22, %c0_23, %c0_24] : memref<4x9x9x4xbf16, #tpu.memory_space<vmem>>, vector<1x8x8x4xbf16>
    %23 = vector.shape_cast %22 : vector<1x8x8x4xbf16> to vector<8x8x4xbf16>
    %24 = vector.shape_cast %23 : vector<8x8x4xbf16> to vector<64x4xbf16>
    %c3 = arith.constant 3 : index
    %c0_25 = arith.constant 0 : index
    %c0_26 = arith.constant 0 : index
    %25 = vector.load %arg2[%c3, %c0_25, %c0_26] : memref<9x4x8xbf16, #tpu.memory_space<vmem>>, vector<1x4x8xbf16>
    %26 = vector.shape_cast %25 : vector<1x4x8xbf16> to vector<4x8xbf16>
    %cst_27 = arith.constant dense<0.000000e+00> : vector<64x8xf32>
    %27 = tpu.matmul %24, %26, %cst_27 {dimension_numbers = #tpu.dot_dimension_numbers<[1], [0], [0], [1], [0, 0, 1, 1], [], []>} : vector<64x4xbf16>, vector<4x8xbf16>, vector<64x8xf32> -> vector<64x8xf32>
    %28 = arith.addf %21, %27 : vector<64x8xf32>
    %c3_28 = arith.constant 3 : index
    %c0_29 = arith.constant 0 : index
    %c0_30 = arith.constant 0 : index
    %c0_31 = arith.constant 0 : index
    %29 = vector.load %arg1[%c3_28, %c0_29, %c0_30, %c0_31] : memref<4x9x9x4xbf16, #tpu.memory_space<vmem>>, vector<1x8x8x4xbf16>
    %30 = vector.shape_cast %29 : vector<1x8x8x4xbf16> to vector<8x8x4xbf16>
    %31 = vector.shape_cast %30 : vector<8x8x4xbf16> to vector<64x4xbf16>
    %c4 = arith.constant 4 : index
    %c0_32 = arith.constant 0 : index
    %c0_33 = arith.constant 0 : index
    %32 = vector.load %arg2[%c4, %c0_32, %c0_33] : memref<9x4x8xbf16, #tpu.memory_space<vmem>>, vector<1x4x8xbf16>
    %33 = vector.shape_cast %32 : vector<1x4x8xbf16> to vector<4x8xbf16>
    %cst_34 = arith.constant dense<0.000000e+00> : vector<64x8xf32>
    %34 = tpu.matmul %31, %33, %cst_34 {dimension_numbers = #tpu.dot_dimension_numbers<[1], [0], [0], [1], [0, 0, 1, 1], [], []>} : vector<64x4xbf16>, vector<4x8xbf16>, vector<64x8xf32> -> vector<64x8xf32>
    %35 = arith.addf %28, %34 : vector<64x8xf32>
    %c2_35 = arith.constant 2 : index
    %c0_36 = arith.constant 0 : index
    %c1_37 = arith.constant 1 : index
    %c0_38 = arith.constant 0 : index
    %36 = vector.load %arg1[%c2_35, %c0_36, %c1_37, %c0_38] : memref<4x9x9x4xbf16, #tpu.memory_space<vmem>>, vector<1x8x8x4xbf16>
    %37 = vector.shape_cast %36 : vector<1x8x8x4xbf16> to vector<8x8x4xbf16>
    %38 = vector.shape_cast %37 : vector<8x8x4xbf16> to vector<64x4xbf16>
    %c5 = arith.constant 5 : index
    %c0_39 = arith.constant 0 : index
    %c0_40 = arith.constant 0 : index
    %39 = vector.load %arg2[%c5, %c0_39, %c0_40] : memref<9x4x8xbf16, #tpu.memory_space<vmem>>, vector<1x4x8xbf16>
    %40 = vector.shape_cast %39 : vector<1x4x8xbf16> to vector<4x8xbf16>
    %cst_41 = arith.constant dense<0.000000e+00> : vector<64x8xf32>
    %41 = tpu.matmul %38, %40, %cst_41 {dimension_numbers = #tpu.dot_dimension_numbers<[1], [0], [0], [1], [0, 0, 1, 1], [], []>} : vector<64x4xbf16>, vector<4x8xbf16>, vector<64x8xf32> -> vector<64x8xf32>
    %42 = arith.addf %35, %41 : vector<64x8xf32>
    %c0_42 = arith.constant 0 : index
    %c1_43 = arith.constant 1 : index
    %c0_44 = arith.constant 0 : index
    %c0_45 = arith.constant 0 : index
    %43 = vector.load %arg1[%c0_42, %c1_43, %c0_44, %c0_45] : memref<4x9x9x4xbf16, #tpu.memory_space<vmem>>, vector<1x8x8x4xbf16>
    %44 = vector.shape_cast %43 : vector<1x8x8x4xbf16> to vector<8x8x4xbf16>
    %45 = vector.shape_cast %44 : vector<8x8x4xbf16> to vector<64x4xbf16>
    %c6 = arith.constant 6 : index
    %c0_46 = arith.constant 0 : index
    %c0_47 = arith.constant 0 : index
    %46 = vector.load %arg2[%c6, %c0_46, %c0_47] : memref<9x4x8xbf16, #tpu.memory_space<vmem>>, vector<1x4x8xbf16>
    %47 = vector.shape_cast %46 : vector<1x4x8xbf16> to vector<4x8xbf16>
    %cst_48 = arith.constant dense<0.000000e+00> : vector<64x8xf32>
    %48 = tpu.matmul %45, %47, %cst_48 {dimension_numbers = #tpu.dot_dimension_numbers<[1], [0], [0], [1], [0, 0, 1, 1], [], []>} : vector<64x4xbf16>, vector<4x8xbf16>, vector<64x8xf32> -> vector<64x8xf32>
    %49 = arith.addf %42, %48 : vector<64x8xf32>
    %c1_49 = arith.constant 1 : index
    %c1_50 = arith.constant 1 : index
    %c0_51 = arith.constant 0 : index
    %c0_52 = arith.constant 0 : index
    %50 = vector.load %arg1[%c1_49, %c1_50, %c0_51, %c0_52] : memref<4x9x9x4xbf16, #tpu.memory_space<vmem>>, vector<1x8x8x4xbf16>
    %51 = vector.shape_cast %50 : vector<1x8x8x4xbf16> to vector<8x8x4xbf16>
    %52 = vector.shape_cast %51 : vector<8x8x4xbf16> to vector<64x4xbf16>
    %c7 = arith.constant 7 : index
    %c0_53 = arith.constant 0 : index
    %c0_54 = arith.constant 0 : index
    %53 = vector.load %arg2[%c7, %c0_53, %c0_54] : memref<9x4x8xbf16, #tpu.memory_space<vmem>>, vector<1x4x8xbf16>
    %54 = vector.shape_cast %53 : vector<1x4x8xbf16> to vector<4x8xbf16>
    %cst_55 = arith.constant dense<0.000000e+00> : vector<64x8xf32>
    %55 = tpu.matmul %52, %54, %cst_55 {dimension_numbers = #tpu.dot_dimension_numbers<[1], [0], [0], [1], [0, 0, 1, 1], [], []>} : vector<64x4xbf16>, vector<4x8xbf16>, vector<64x8xf32> -> vector<64x8xf32>
    %56 = arith.addf %49, %55 : vector<64x8xf32>
    %c0_56 = arith.constant 0 : index
    %c1_57 = arith.constant 1 : index
    %c1_58 = arith.constant 1 : index
    %c0_59 = arith.constant 0 : index
    %57 = vector.load %arg1[%c0_56, %c1_57, %c1_58, %c0_59] : memref<4x9x9x4xbf16, #tpu.memory_space<vmem>>, vector<1x8x8x4xbf16>
    %58 = vector.shape_cast %57 : vector<1x8x8x4xbf16> to vector<8x8x4xbf16>
    %59 = vector.shape_cast %58 : vector<8x8x4xbf16> to vector<64x4xbf16>
    %c8 = arith.constant 8 : index
    %c0_60 = arith.constant 0 : index
    %c0_61 = arith.constant 0 : index
    %60 = vector.load %arg2[%c8, %c0_60, %c0_61] : memref<9x4x8xbf16, #tpu.memory_space<vmem>>, vector<1x4x8xbf16>
    %61 = vector.shape_cast %60 : vector<1x4x8xbf16> to vector<4x8xbf16>
    %cst_62 = arith.constant dense<0.000000e+00> : vector<64x8xf32>
    %62 = tpu.matmul %59, %61, %cst_62 {dimension_numbers = #tpu.dot_dimension_numbers<[1], [0], [0], [1], [0, 0, 1, 1], [], []>} : vector<64x4xbf16>, vector<4x8xbf16>, vector<64x8xf32> -> vector<64x8xf32>
    %63 = arith.addf %56, %62 : vector<64x8xf32>
    %c0_63 = arith.constant 0 : index
    %c0_64 = arith.constant 0 : index
    %64 = vector.load %arg3[%c0_63, %c0_64] : memref<1x8xf32, #tpu.memory_space<vmem>>, vector<1x8xf32>
    %65 = vector.broadcast %64 : vector<1x8xf32> to vector<64x8xf32>
    %66 = arith.addf %63, %65 : vector<64x8xf32>
    %cst_65 = arith.constant 0.000000e+00 : f32
    %67 = vector.broadcast %cst_65 : f32 to vector<64x8xf32>
    %68 = arith.maximumf %66, %67 : vector<64x8xf32>
    %69 = arith.truncf %68 : vector<64x8xf32> to vector<64x8xbf16>
    %cst_66 = arith.constant 0.000000e+00 : bf16
    %70 = vector.broadcast %cst_66 : bf16 to vector<10x10x8xbf16>
    %c0_67 = arith.constant 0 : index
    %c0_68 = arith.constant 0 : index
    %c0_69 = arith.constant 0 : index
    %71 = vector.load %arg10[%c0_67, %c0_68, %c0_69] : memref<10x10x8xbf16, #tpu.memory_space<vmem>>, vector<10x10x8xbf16>
    tpu.vector_store %arg10[%c0_67, %c0_68, %c0_69], %70 {strides = array<i32>} : memref<10x10x8xbf16, #tpu.memory_space<vmem>>, vector<10x10x8xbf16>,
    %72 = vector.shape_cast %69 : vector<64x8xbf16> to vector<8x8x8xbf16>
    %c1_70 = arith.constant 1 : index
    %c1_71 = arith.constant 1 : index
    %c0_72 = arith.constant 0 : index
    %73 = vector.load %arg10[%c1_70, %c1_71, %c0_72] : memref<10x10x8xbf16, #tpu.memory_space<vmem>>, vector<8x8x8xbf16>
    tpu.vector_store %arg10[%c1_70, %c1_71, %c0_72], %72 {strides = array<i32>} : memref<10x10x8xbf16, #tpu.memory_space<vmem>>, vector<8x8x8xbf16>,
    %cst_73 = arith.constant 0.000000e+00 : f32
    %74 = vector.broadcast %cst_73 : f32 to vector<64x8xf32>
    %c0_74 = arith.constant 0 : index
    %c0_75 = arith.constant 0 : index
    %c0_76 = arith.constant 0 : index
    %75 = vector.load %arg10[%c0_74, %c0_75, %c0_76] : memref<10x10x8xbf16, #tpu.memory_space<vmem>>, vector<8x8x8xbf16>
    %76 = vector.shape_cast %75 : vector<8x8x8xbf16> to vector<64x8xbf16>
    %c0_77 = arith.constant 0 : index
    %c0_78 = arith.constant 0 : index
    %c0_79 = arith.constant 0 : index
    %77 = vector.load %arg4[%c0_77, %c0_78, %c0_79] : memref<9x8x8xbf16, #tpu.memory_space<vmem>>, vector<1x8x8xbf16>
    %78 = vector.shape_cast %77 : vector<1x8x8xbf16> to vector<8x8xbf16>
    %cst_80 = arith.constant dense<0.000000e+00> : vector<64x8xf32>
    %79 = tpu.matmul %76, %78, %cst_80 {dimension_numbers = #tpu.dot_dimension_numbers<[1], [0], [0], [1], [0, 0, 1, 1], [], []>} : vector<64x8xbf16>, vector<8x8xbf16>, vector<64x8xf32> -> vector<64x8xf32>
    %80 = arith.addf %74, %79 : vector<64x8xf32>
    %c0_81 = arith.constant 0 : index
    %c1_82 = arith.constant 1 : index
    %c0_83 = arith.constant 0 : index
    %81 = vector.load %arg10[%c0_81, %c1_82, %c0_83] : memref<10x10x8xbf16, #tpu.memory_space<vmem>>, vector<8x8x8xbf16>
    %82 = vector.shape_cast %81 : vector<8x8x8xbf16> to vector<64x8xbf16>
    %c1_84 = arith.constant 1 : index
    %c0_85 = arith.constant 0 : index
    %c0_86 = arith.constant 0 : index
    %83 = vector.load %arg4[%c1_84, %c0_85, %c0_86] : memref<9x8x8xbf16, #tpu.memory_space<vmem>>, vector<1x8x8xbf16>
    %84 = vector.shape_cast %83 : vector<1x8x8xbf16> to vector<8x8xbf16>
    %cst_87 = arith.constant dense<0.000000e+00> : vector<64x8xf32>
    %85 = tpu.matmul %82, %84, %cst_87 {dimension_numbers = #tpu.dot_dimension_numbers<[1], [0], [0], [1], [0, 0, 1, 1], [], []>} : vector<64x8xbf16>, vector<8x8xbf16>, vector<64x8xf32> -> vector<64x8xf32>
    %86 = arith.addf %80, %85 : vector<64x8xf32>
    %c0_88 = arith.constant 0 : index
    %c2_89 = arith.constant 2 : index
    %c0_90 = arith.constant 0 : index
    %87 = vector.load %arg10[%c0_88, %c2_89, %c0_90] : memref<10x10x8xbf16, #tpu.memory_space<vmem>>, vector<8x8x8xbf16>
    %88 = vector.shape_cast %87 : vector<8x8x8xbf16> to vector<64x8xbf16>
    %c2_91 = arith.constant 2 : index
    %c0_92 = arith.constant 0 : index
    %c0_93 = arith.constant 0 : index
    %89 = vector.load %arg4[%c2_91, %c0_92, %c0_93] : memref<9x8x8xbf16, #tpu.memory_space<vmem>>, vector<1x8x8xbf16>
    %90 = vector.shape_cast %89 : vector<1x8x8xbf16> to vector<8x8xbf16>
    %cst_94 = arith.constant dense<0.000000e+00> : vector<64x8xf32>
    %91 = tpu.matmul %88, %90, %cst_94 {dimension_numbers = #tpu.dot_dimension_numbers<[1], [0], [0], [1], [0, 0, 1, 1], [], []>} : vector<64x8xbf16>, vector<8x8xbf16>, vector<64x8xf32> -> vector<64x8xf32>
    %92 = arith.addf %86, %91 : vector<64x8xf32>
    %c1_95 = arith.constant 1 : index
    %c0_96 = arith.constant 0 : index
    %c0_97 = arith.constant 0 : index
    %93 = vector.load %arg10[%c1_95, %c0_96, %c0_97] : memref<10x10x8xbf16, #tpu.memory_space<vmem>>, vector<8x8x8xbf16>
    %94 = vector.shape_cast %93 : vector<8x8x8xbf16> to vector<64x8xbf16>
    %c3_98 = arith.constant 3 : index
    %c0_99 = arith.constant 0 : index
    %c0_100 = arith.constant 0 : index
    %95 = vector.load %arg4[%c3_98, %c0_99, %c0_100] : memref<9x8x8xbf16, #tpu.memory_space<vmem>>, vector<1x8x8xbf16>
    %96 = vector.shape_cast %95 : vector<1x8x8xbf16> to vector<8x8xbf16>
    %cst_101 = arith.constant dense<0.000000e+00> : vector<64x8xf32>
    %97 = tpu.matmul %94, %96, %cst_101 {dimension_numbers = #tpu.dot_dimension_numbers<[1], [0], [0], [1], [0, 0, 1, 1], [], []>} : vector<64x8xbf16>, vector<8x8xbf16>, vector<64x8xf32> -> vector<64x8xf32>
    %98 = arith.addf %92, %97 : vector<64x8xf32>
    %c1_102 = arith.constant 1 : index
    %c1_103 = arith.constant 1 : index
    %c0_104 = arith.constant 0 : index
    %99 = vector.load %arg10[%c1_102, %c1_103, %c0_104] : memref<10x10x8xbf16, #tpu.memory_space<vmem>>, vector<8x8x8xbf16>
    %100 = vector.shape_cast %99 : vector<8x8x8xbf16> to vector<64x8xbf16>
    %c4_105 = arith.constant 4 : index
    %c0_106 = arith.constant 0 : index
    %c0_107 = arith.constant 0 : index
    %101 = vector.load %arg4[%c4_105, %c0_106, %c0_107] : memref<9x8x8xbf16, #tpu.memory_space<vmem>>, vector<1x8x8xbf16>
    %102 = vector.shape_cast %101 : vector<1x8x8xbf16> to vector<8x8xbf16>
    %cst_108 = arith.constant dense<0.000000e+00> : vector<64x8xf32>
    %103 = tpu.matmul %100, %102, %cst_108 {dimension_numbers = #tpu.dot_dimension_numbers<[1], [0], [0], [1], [0, 0, 1, 1], [], []>} : vector<64x8xbf16>, vector<8x8xbf16>, vector<64x8xf32> -> vector<64x8xf32>
    %104 = arith.addf %98, %103 : vector<64x8xf32>
    %c1_109 = arith.constant 1 : index
    %c2_110 = arith.constant 2 : index
    %c0_111 = arith.constant 0 : index
    %105 = vector.load %arg10[%c1_109, %c2_110, %c0_111] : memref<10x10x8xbf16, #tpu.memory_space<vmem>>, vector<8x8x8xbf16>
    %106 = vector.shape_cast %105 : vector<8x8x8xbf16> to vector<64x8xbf16>
    %c5_112 = arith.constant 5 : index
    %c0_113 = arith.constant 0 : index
    %c0_114 = arith.constant 0 : index
    %107 = vector.load %arg4[%c5_112, %c0_113, %c0_114] : memref<9x8x8xbf16, #tpu.memory_space<vmem>>, vector<1x8x8xbf16>
    %108 = vector.shape_cast %107 : vector<1x8x8xbf16> to vector<8x8xbf16>
    %cst_115 = arith.constant dense<0.000000e+00> : vector<64x8xf32>
    %109 = tpu.matmul %106, %108, %cst_115 {dimension_numbers = #tpu.dot_dimension_numbers<[1], [0], [0], [1], [0, 0, 1, 1], [], []>} : vector<64x8xbf16>, vector<8x8xbf16>, vector<64x8xf32> -> vector<64x8xf32>
    %110 = arith.addf %104, %109 : vector<64x8xf32>
    %c2_116 = arith.constant 2 : index
    %c0_117 = arith.constant 0 : index
    %c0_118 = arith.constant 0 : index
    %111 = vector.load %arg10[%c2_116, %c0_117, %c0_118] : memref<10x10x8xbf16, #tpu.memory_space<vmem>>, vector<8x8x8xbf16>
    %112 = vector.shape_cast %111 : vector<8x8x8xbf16> to vector<64x8xbf16>
    %c6_119 = arith.constant 6 : index
    %c0_120 = arith.constant 0 : index
    %c0_121 = arith.constant 0 : index
    %113 = vector.load %arg4[%c6_119, %c0_120, %c0_121] : memref<9x8x8xbf16, #tpu.memory_space<vmem>>, vector<1x8x8xbf16>
    %114 = vector.shape_cast %113 : vector<1x8x8xbf16> to vector<8x8xbf16>
    %cst_122 = arith.constant dense<0.000000e+00> : vector<64x8xf32>
    %115 = tpu.matmul %112, %114, %cst_122 {dimension_numbers = #tpu.dot_dimension_numbers<[1], [0], [0], [1], [0, 0, 1, 1], [], []>} : vector<64x8xbf16>, vector<8x8xbf16>, vector<64x8xf32> -> vector<64x8xf32>
    %116 = arith.addf %110, %115 : vector<64x8xf32>
    %c2_123 = arith.constant 2 : index
    %c1_124 = arith.constant 1 : index
    %c0_125 = arith.constant 0 : index
    %117 = vector.load %arg10[%c2_123, %c1_124, %c0_125] : memref<10x10x8xbf16, #tpu.memory_space<vmem>>, vector<8x8x8xbf16>
    %118 = vector.shape_cast %117 : vector<8x8x8xbf16> to vector<64x8xbf16>
    %c7_126 = arith.constant 7 : index
    %c0_127 = arith.constant 0 : index
    %c0_128 = arith.constant 0 : index
    %119 = vector.load %arg4[%c7_126, %c0_127, %c0_128] : memref<9x8x8xbf16, #tpu.memory_space<vmem>>, vector<1x8x8xbf16>
    %120 = vector.shape_cast %119 : vector<1x8x8xbf16> to vector<8x8xbf16>
    %cst_129 = arith.constant dense<0.000000e+00> : vector<64x8xf32>
    %121 = tpu.matmul %118, %120, %cst_129 {dimension_numbers = #tpu.dot_dimension_numbers<[1], [0], [0], [1], [0, 0, 1, 1], [], []>} : vector<64x8xbf16>, vector<8x8xbf16>, vector<64x8xf32> -> vector<64x8xf32>
    %122 = arith.addf %116, %121 : vector<64x8xf32>
    %c2_130 = arith.constant 2 : index
    %c2_131 = arith.constant 2 : index
    %c0_132 = arith.constant 0 : index
    %123 = vector.load %arg10[%c2_130, %c2_131, %c0_132] : memref<10x10x8xbf16, #tpu.memory_space<vmem>>, vector<8x8x8xbf16>
    %124 = vector.shape_cast %123 : vector<8x8x8xbf16> to vector<64x8xbf16>
    %c8_133 = arith.constant 8 : index
    %c0_134 = arith.constant 0 : index
    %c0_135 = arith.constant 0 : index
    %125 = vector.load %arg4[%c8_133, %c0_134, %c0_135] : memref<9x8x8xbf16, #tpu.memory_space<vmem>>, vector<1x8x8xbf16>
    %126 = vector.shape_cast %125 : vector<1x8x8xbf16> to vector<8x8xbf16>
    %cst_136 = arith.constant dense<0.000000e+00> : vector<64x8xf32>
    %127 = tpu.matmul %124, %126, %cst_136 {dimension_numbers = #tpu.dot_dimension_numbers<[1], [0], [0], [1], [0, 0, 1, 1], [], []>} : vector<64x8xbf16>, vector<8x8xbf16>, vector<64x8xf32> -> vector<64x8xf32>
    %128 = arith.addf %122, %127 : vector<64x8xf32>
    %c0_137 = arith.constant 0 : index
    %c0_138 = arith.constant 0 : index
    %129 = vector.load %arg5[%c0_137, %c0_138] : memref<1x8xf32, #tpu.memory_space<vmem>>, vector<1x8xf32>
    %130 = vector.broadcast %129 : vector<1x8xf32> to vector<64x8xf32>
    %131 = arith.addf %128, %130 : vector<64x8xf32>
    %c0_139 = arith.constant 0 : index
    %c0_140 = arith.constant 0 : index
    %c0_141 = arith.constant 0 : index
    %c0_142 = arith.constant 0 : index
    %132 = vector.load %arg6[%c0_139, %c0_140, %c0_141, %c0_142] : memref<1x8x8x4xbf16, #tpu.memory_space<vmem>>, vector<1x8x8x4xbf16>
    %133 = vector.shape_cast %132 : vector<1x8x8x4xbf16> to vector<8x8x4xbf16>
    %134 = vector.shape_cast %133 : vector<8x8x4xbf16> to vector<64x4xbf16>
    %c0_143 = arith.constant 0 : index
    %c0_144 = arith.constant 0 : index
    %c0_145 = arith.constant 0 : index
    %135 = vector.load %arg7[%c0_143, %c0_144, %c0_145] : memref<1x4x8xbf16, #tpu.memory_space<vmem>>, vector<1x4x8xbf16>
    %136 = vector.shape_cast %135 : vector<1x4x8xbf16> to vector<4x8xbf16>
    %cst_146 = arith.constant dense<0.000000e+00> : vector<64x8xf32>
    %137 = tpu.matmul %134, %136, %cst_146 {dimension_numbers = #tpu.dot_dimension_numbers<[1], [0], [0], [1], [0, 0, 1, 1], [], []>} : vector<64x4xbf16>, vector<4x8xbf16>, vector<64x8xf32> -> vector<64x8xf32>
    %138 = arith.addf %131, %137 : vector<64x8xf32>
    %c0_147 = arith.constant 0 : index
    %c0_148 = arith.constant 0 : index
    %139 = vector.load %arg8[%c0_147, %c0_148] : memref<1x8xf32, #tpu.memory_space<vmem>>, vector<1x8xf32>
    %140 = vector.broadcast %139 : vector<1x8xf32> to vector<64x8xf32>
    %141 = arith.addf %138, %140 : vector<64x8xf32>
    %cst_149 = arith.constant 0.000000e+00 : f32
    %142 = vector.broadcast %cst_149 : f32 to vector<64x8xf32>
    %143 = arith.maximumf %141, %142 : vector<64x8xf32>
    %144 = vector.shape_cast %143 : vector<64x8xf32> to vector<1x8x8x8xf32>
    %145 = arith.truncf %144 : vector<1x8x8x8xf32> to vector<1x8x8x8xbf16>
    %c0_150 = arith.constant 0 : index
    %c0_151 = arith.constant 0 : index
    %c0_152 = arith.constant 0 : index
    %c0_153 = arith.constant 0 : index
    %146 = vector.load %arg9[%c0_150, %c0_151, %c0_152, %c0_153] : memref<1x8x8x8xbf16, #tpu.memory_space<vmem>>, vector<1x8x8x8xbf16>
    tpu.vector_store %arg9[%c0_150, %c0_151, %c0_152, %c0_153], %145 {strides = array<i32>} : memref<1x8x8x8xbf16, #tpu.memory_space<vmem>>, vector<1x8x8x8xbf16>,
    return
  }
  func.func @transform_0(%arg0: i32) -> (i32, i32, i32, i32) {
    %c0_i32 = arith.constant 0 : i32
    %c0_i32_0 = arith.constant 0 : i32
    %c0_i32_1 = arith.constant 0 : i32
    %c0_i32_2 = arith.constant 0 : i32
    return %arg0, %c0_i32, %c0_i32_0, %c0_i32_1 : i32, i32, i32, i32
  }
  func.func @transform_1(%arg0: i32) -> (i32, i32, i32) {
    %c0_i32 = arith.constant 0 : i32
    %c0_i32_0 = arith.constant 0 : i32
    %c0_i32_1 = arith.constant 0 : i32
    %c0_i32_2 = arith.constant 0 : i32
    return %c0_i32, %c0_i32_0, %c0_i32_1 : i32, i32, i32
  }
  func.func @transform_2(%arg0: i32) -> (i32, i32) {
    %c0_i32 = arith.constant 0 : i32
    %c0_i32_0 = arith.constant 0 : i32
    %c0_i32_1 = arith.constant 0 : i32
    return %c0_i32, %c0_i32_0 : i32, i32
  }
  func.func @transform_3(%arg0: i32) -> (i32, i32, i32) {
    %c0_i32 = arith.constant 0 : i32
    %c0_i32_0 = arith.constant 0 : i32
    %c0_i32_1 = arith.constant 0 : i32
    %c0_i32_2 = arith.constant 0 : i32
    return %c0_i32, %c0_i32_0, %c0_i32_1 : i32, i32, i32
  }
  func.func @transform_4(%arg0: i32) -> (i32, i32) {
    %c0_i32 = arith.constant 0 : i32
    %c0_i32_0 = arith.constant 0 : i32
    %c0_i32_1 = arith.constant 0 : i32
    return %c0_i32, %c0_i32_0 : i32, i32
  }
  func.func @transform_5(%arg0: i32) -> (i32, i32, i32, i32) {
    %c0_i32 = arith.constant 0 : i32
    %c0_i32_0 = arith.constant 0 : i32
    %c0_i32_1 = arith.constant 0 : i32
    %c0_i32_2 = arith.constant 0 : i32
    return %arg0, %c0_i32, %c0_i32_0, %c0_i32_1 : i32, i32, i32, i32
  }
  func.func @transform_6(%arg0: i32) -> (i32, i32, i32) {
    %c0_i32 = arith.constant 0 : i32
    %c0_i32_0 = arith.constant 0 : i32
    %c0_i32_1 = arith.constant 0 : i32
    %c0_i32_2 = arith.constant 0 : i32
    return %c0_i32, %c0_i32_0, %c0_i32_1 : i32, i32, i32
  }
  func.func @transform_7(%arg0: i32) -> (i32, i32) {
    %c0_i32 = arith.constant 0 : i32
    %c0_i32_0 = arith.constant 0 : i32
    %c0_i32_1 = arith.constant 0 : i32
    return %c0_i32, %c0_i32_0 : i32, i32
  }
  func.func @transform_8(%arg0: i32) -> (i32, i32, i32, i32) {
    %c0_i32 = arith.constant 0 : i32
    %c0_i32_0 = arith.constant 0 : i32
    %c0_i32_1 = arith.constant 0 : i32
    %c0_i32_2 = arith.constant 0 : i32
    return %arg0, %c0_i32, %c0_i32_0, %c0_i32_1 : i32, i32, i32, i32
  }
}

</mosaic_0001>

<bundles_post_ra>
// kernel: tpu_custom_call.1
= control target key start
LH: loop header
LB: loop body
LE: loop exit
PB: predicated region body
PF: predicated region fallthrough
CT: control target
= control target key end

     0   :  { %13 = vsyncpa [#allocation4], 0  ;;  %s5413_s0 = inlined_call_operand.vmem [shape: bf16[8,9,9,4], index: 0, kind: input, shape index: {}]   ;;  %s5414_s1 = inlined_call_operand.vmem [shape: bf16[9,4,8], index: 1, kind: input, shape index: {}]   ;;  %s5415_s2 = inlined_call_operand.vmem [shape: f32[1,8], index: 2, kind: input, shape index: {}]   ;;  %s5416_s3 = inlined_call_operand.vmem [shape: bf16[9,8,8], index: 3, kind: input, shape index: {}]   ;;  %s5417_s4 = inlined_call_operand.vmem [shape: f32[1,8], index: 4, kind: input, shape index: {}]   ;;  %s5418_s5 = inlined_call_operand.vmem [shape: bf16[2,8,8,4], index: 5, kind: input, shape index: {}]   ;;  %s5419_s6 = inlined_call_operand.vmem [shape: bf16[1,4,8], index: 6, kind: input, shape index: {}]   ;;  %s5420_s7 = inlined_call_operand.vmem [shape: f32[1,8], index: 7, kind: input, shape index: {}]   ;;  %s5421_s8 = inlined_call_operand.hbm [shape: bf16[2,8,8,8], index: 8, kind: output, shape index: {}]  }
   0x1   :  { %15 = vsyncpa [#allocation4 + $0x1], 0  ;;  %s4629_s27 = smov 0   ;;  %s4631_s28 = smov 0  }
   0x2   :  { %s4633_s29 = smov 0   ;;  %s4635_s30 = smov 0  }
   0x3 LB: > { %s4650_s9 = sadd.s32 4294967295, %s4578_s30   ;;  %s3683_s10 = sadd.s32 4294967294, %s4578_s30   ;;  %s4578_s30 = sphi %s4635_s30, %s5435_s30   ;;  %s4574_s29 = sphi %s4633_s29, %s5434_s29   ;;  %s4570_s28 = sphi %s4631_s28, %s5433_s28   ;;  %s4566_s27 = sphi %s4629_s27, %s5432_s27  }
   0x4   : > { %s4654_s11 = sadd.s32 1, %s4578_s30   ;;  %s206_s12 = sadd.s32 1, %s4574_s29 }
   0x5   : > { %s203_s13 = ssub.s32 %s4578_s30, %s4654_s11  ;;  %p216_p0 = scmp.ne.s32.totalorder %s4574_s29, %s4570_s28 }
   0x6   : > { %p204_p1 = scmp.eq.s32.totalorder %s203_s13, 0  ;;  %p217_p2 = scmp.eq.s32.totalorder %s4650_s9, 1 }
   0x7   : > { %p222_p3 = scmp.ne.s32.totalorder %s4570_s28, %s4566_s27  ;;  %p223_p4 = scmp.eq.s32.totalorder %s3683_s10, 1 }
   0x8   : > { %s4665_s14 = scalar_select %p204_p1, %s4574_s29, %s206_s12  }
   0x9   : > { %p4667_p5 = por %p217_p2, %p216_p0  ;;  %p4671_p6 = por %p223_p4, %p222_p3 }
   0xa   : > { %p3686_p7 = scmp.ge.s32.totalorder %s4578_s30, 1  ;;  %p277_p8 = scmp.lt.s32.totalorder %s4578_s30, 3 }
   0xc   : > { %p278_p9 = pnand %p3686_p7, %p277_p8 }
   0xd   : > { %v3700_v0 = vld [vmem:[%s5414_s1 + $0x2] sm:$0x3] (!%p278_p9)  ;;  %vm383_vm0 = vcmask (!%p278_p9), 1041408   ;;  %s3688_s19 = sshll.u32 (!%p278_p9), %s4650_s9, 2  ;;  %v338_v2 = vld [vmem:[%s5414_s1] sm:$0x3] (!%p278_p9) }
   0xe   : > { %281 = sbr.rel (%p278_p9) target bundleno = 801 (0x321), region = 52  ;;  %4413 = vmatprep.subr.msk.bf16.mxu0 (!%p278_p9), %vm383_vm0, %v3700_v0  ;;  %v385_v1 = vsel (!%p278_p9), %vm383_vm0, %v3700_v0, 0  ;;  %p318_p10 = scmp.lt.s32.totalorder (!%p278_p9), %s3688_s19, 7  ;;  %vm370_vm1 = vcmask (!%p278_p9), 31744   ;;  %v485_v3 = vsel (!%p278_p9), %vm383_vm0, %v338_v2, 0  ;;  %vm1748_vm5 = vcmask (!%p278_p9), 60416  }
   0xf   : > { %4078 = vmatpush3.bf16.msra.mxu0 (!%p278_p9), %v385_v1  ;;  %v3717_v5 = vld [vmem:[%s5414_s1 + $0x4] sm:$0x3] (!%p278_p9)  ;;  %vm568_vm2 = vsmask.f32 (!%p278_p9), 3328  ;;  %vm569_vm3 = vsmask.f32 (!%p278_p9), 7440 }
  0x10   : > { %4414 = vmatprep.subr.msk.bf16.mxu0 (!%p278_p9), %vm383_vm0, %v338_v2  ;;  %vm4720_vm4 = vmor (!%p278_p9), %vm568_vm2, %vm569_vm3  ;;  %v710_v50 = vsel (!%p278_p9), %vm383_vm0, %v3717_v5, 0  ;;  %v3734_v55 = vld [vmem:[%s5414_s1 + $0x6] sm:$0x3] (!%p278_p9)  ;;  %vm1750_vm6 = vcmask (!%p278_p9), 57344   ;;  %vm2081_vm7 = vcmask (!%p278_p9), 1043456   ;;  %vm2068_vm12 = vcmask (!%p278_p9), 64512  }
  0x11   : > { %vm1872_vm8 = vsmask.f32 (!%p278_p9), 7938  ;;  %vm1878_vm9 = vsmask.f32 (!%p278_p9), 256  ;;  %vm2274_vm13 = vcmask (!%p278_p9), 1042432   ;;  %vm2275_vm14 = vcmask (!%p278_p9), 1046532  }
  0x12   : > { %vm4947_vm10 = vmand (!%p278_p9), %vm1748_vm5, %vm1872_vm8  ;;  %p324_p11 = scmp.lt.s32.totalorder (!%p278_p9), %s4650_s9, 1  ;;  %s314_s18 = sand.u32 (!%p278_p9), 1, %s4570_s28  }
  0x13   : > { %vm4954_vm11 = vmand (!%p278_p9), %vm1750_vm6, %vm1878_vm9  ;;  %s4581_s12 = smov (!%p278_p9), [#allocation3]  }
  0x14   : > { %vm5094_vm15 = vmor (!%p278_p9), %vm2274_vm13, %vm2275_vm14  ;;  %s4520_s13 = sshll.u32 (!%p278_p9), %s4581_s12, 4  ;;  %s4521_s13 = int_to_ptr.vmem [resolvable:$false] %s4520_s13 }
  0x15   : > { %s5437_s19 = smov (!%p318_p10, %s3688_s19), 7 }
  0x16   : > { %s4433_s22 = smul.u32 72, %s5437_s19  ;;  %s4522_s19 = scalar_lea.vmem %s4521_s13, 1024 }
  0x17   : > { %s325_s10 = scalar_select %p324_p11, %s4650_s9, 1 }
  0x18   : > { %s4690_s25 = scalar_lea.vmem %s5413_s0, %s4433_s22  ;;  %s3981_s22 = sshll.u32 %s4650_s9, 9 }
  0x19   : > { %v4476_v4 = vld [vmem:[%s4690_s25 + $0x48] ss:$8 sps:$4 sm:$0xff]   ;;  %v4477_v6 = vld [vmem:[%s4690_s25 + $0x58] ss:$8 sps:$4 sm:$0xff]   ;;  %v553_v11 = vld [vmem:[%s4690_s25 + $0x4] sm:$0x1] }
  0x1a   : > { %4079 = vmatprep.mubr.msk.bf16.mxu0 %vm370_vm1, %v4476_v4  ;;  %v4478_v7 = vld [vmem:[%s4690_s25 + $0x68] ss:$8 sps:$4 sm:$0xff]   ;;  %v4479_v8 = vld [vmem:[%s4690_s25 + $0x78] ss:$8 sps:$4 sm:$0xff]   ;;  %v555_v13 = vld [vmem:[%s4690_s25 + $0xc] sm:$0x1] }
  0x1b   : > { %4080 = vmatmul.mubr.msk.bf16.vlgmr.msra.gmra.mrb[0].mxu0 %vm370_vm1, %v4477_v6  ;;  %v4480_v9 = vld [vmem:[%s4690_s25] ss:$8 sps:$4 sm:$0xff]   ;;  %v581_v17 = vshll.u32 %v553_v11, 16  ;;  %v556_v19 = vld [vmem:[%s4690_s25 + $0x10] sm:$0xf]  ;;  %v595_v23 = vshll.u32 %v555_v13, 16 }
  0x1c   : > { %4088 = vmatpush3.bf16.msra.mxu0 %v485_v3  ;;  %4083 = vmatprep.mubr.msk.bf16.mxu0 %vm370_vm1, %v4478_v7  ;;  %v552_v10 = vld [vmem:[%s4690_s25] sm:$0xf]  ;;  %v554_v12 = vld [vmem:[%s4690_s25 + $0x8] sm:$0xf]  ;;  %v558_v24 = vld [vmem:[%s4690_s25 + $0x18] sm:$0xf] }
  0x1d   : > { %4415 = vmatprep.subr.msk.bf16.mxu0 %vm383_vm0, %v3717_v5  ;;  %v572_v14 = vshrl.u32 %v552_v10, 16  ;;  %v575_v15 = vshll.u32 %v552_v10, 16  ;;  %v586_v16 = vshrl.u32 %v554_v12, 16  ;;  %v589_v18 = vshll.u32 %v554_v12, 16  ;;  %v4481_v28 = vld [vmem:[%s4690_s25 + $0x10] ss:$8 sps:$4 sm:$0xff]  }
  0x1e   : > { %v600_v26 = vshrl.u32 %v556_v19, 16  ;;  %v603_v27 = vshll.u32 %v556_v19, 16  ;;  %v557_v30 = vld [vmem:[%s4690_s25 + $0x14] sm:$0x1]  ;;  %v614_v31 = vshrl.u32 %v558_v24, 16  ;;  %v617_v32 = vshll.u32 %v558_v24, 16 }
  0x1f   : > { %v574_v20 = vrot.slane %v572_v14, 4  ;;  %v577_v21 = vrot.slane %v575_v15, 5  ;;  %v588_v22 = vrot.slane %v586_v16, 4  ;;  %v591_v25 = vrot.slane %v589_v18, 5  ;;  %v560_v33 = vld [vmem:[%s4690_s25 + $0x20] sm:$0xf] }
  0x20   : > { %v4482_v34 = vld [vmem:[%s4690_s25 + $0x20] ss:$8 sps:$4 sm:$0xff]   ;;  %v583_v35 = vrot.slane %v581_v17, 5  ;;  %v559_v37 = vld [vmem:[%s4690_s25 + $0x1c] sm:$0x1]  ;;  %v602_v38 = vrot.slane %v600_v26, 4 }
  0x21   : > { %v578_v29 = vor.u32 %v577_v21, %v574_v20  ;;  %v592_v36 = vor.u32 %v591_v25, %v588_v22  ;;  %v605_v39 = vrot.slane %v603_v27, 5  ;;  %v597_v42 = vrot.slane %v595_v23, 5  ;;  %v562_v45 = vld [vmem:[%s4690_s25 + $0x28] sm:$0xf]  ;;  %v561_v48 = vld [vmem:[%s4690_s25 + $0x24] sm:$0x1] }
  0x22   : > { %v616_v43 = vrot.slane %v614_v31, 4  ;;  %v619_v44 = vrot.slane %v617_v32, 5  ;;  %v609_v47 = vshll.u32 %v557_v30, 16  ;;  %v628_v49 = vshrl.u32 %v560_v33, 16  ;;  %v563_v52 = vld [vmem:[%s4690_s25 + $0x2c] sm:$0x1] }
  0x23   : > { %4084 = vmatmul.mubr.msk.bf16.gmra.mrb[4].mxu0 %vm370_vm1, %v4479_v8  ;;  %v579_v41 = vrot.slane %v578_v29, 4  ;;  %v593_v46 = vrot.slane %v592_v36, 4  ;;  %v623_v51 = vshll.u32 %v559_v37, 16  ;;  %v631_v53 = vshll.u32 %v560_v33, 16  ;;  %v564_v59 = vld [vmem:[%s4690_s25 + $0x30] sm:$0xf] }
  0x24   : > { %4089 = vmatprep.mubr.msk.bf16.mxu0 %vm370_vm1, %v4480_v9  ;;  %v606_v56 = vor.u32 %v605_v39, %v602_v38  ;;  %v630_v57 = vrot.slane %v628_v49, 4  ;;  %v642_v58 = vshrl.u32 %v562_v45, 16  ;;  %v620_v61 = vor.u32 %v619_v44, %v616_v43  ;;  %v566_v0 = vld [vmem:[%s4690_s25 + $0x38] sm:$0xf]  ;;  %v565_v13 = vld [vmem:[%s4690_s25 + $0x34] sm:$0x1] }
  0x25   : > { %v584_v54 = vsel %vm4720_vm4, %v579_v41, %v583_v35  ;;  %v598_v60 = vsel %vm4720_vm4, %v593_v46, %v597_v42  ;;  %v633_v62 = vrot.slane %v631_v53, 5  ;;  %v637_v63 = vshll.u32 %v561_v48, 16  ;;  %v4483_v5 = vld [vmem:[%s4690_s25 + $0x30] ss:$8 sps:$4 sm:$0xff]   ;;  %v567_v19 = vld [vmem:[%s4690_s25 + $0x3c] sm:$0x1] }
  0x26   : > { %v611_v1 = vrot.slane %v609_v47, 5  ;;  %v644_v2 = vrot.slane %v642_v58, 4  ;;  %v645_v3 = vshll.u32 %v562_v45, 16  ;;  %v651_v4 = vshll.u32 %v563_v52, 16  ;;  %v3751_v43 = vld [vmem:[%s5414_s1 + $0x8] sm:$0x3] }
  0x27   : > { %v625_v6 = vrot.slane %v623_v51, 5  ;;  %v634_v7 = vor.u32 %v633_v62, %v630_v57  ;;  %v656_v8 = vshrl.u32 %v564_v59, 16  ;;  %v659_v9 = vshll.u32 %v564_v59, 16  ;;  %v4484_v47 = vld [vmem:[%s4690_s25 + $0x90] ss:$8 sps:$4 sm:$0xff]   ;;  %s5372_s9 = scalar_lea.sflag [#allocation4], %s314_s18 }
  0x28   : > { %v3718_v10 = vcombine.low %v584_v54, %v598_v60  ;;  %v607_v11 = vrot.slane %v606_v56, 4  ;;  %v647_v12 = vrot.slane %v645_v3, 5  ;;  %v621_v14 = vrot.slane %v620_v61, 4  ;;  %v4485_v48 = vld [vmem:[%s4690_s25 + $0xa0] ss:$8 sps:$4 sm:$0xff]  }
  0x29   : > { %v639_v15 = vrot.slane %v637_v63, 5  ;;  %v653_v16 = vrot.slane %v651_v4, 5  ;;  %v670_v17 = vshrl.u32 %v566_v0, 16  ;;  %v658_v20 = vrot.slane %v656_v8, 4  ;;  %v3760_v49 = vld [vmem:[%s4690_s25 + $0x90] sm:$0xf] }
  0x2a   : > { %v648_v18 = vor.u32 %v647_v12, %v644_v2  ;;  %v661_v21 = vrot.slane %v659_v9, 5  ;;  %v673_v22 = vshll.u32 %v566_v0, 16  ;;  %v635_v23 = vrot.slane %v634_v7, 4  ;;  %v3762_v51 = vld [vmem:[%s4690_s25 + $0x98] sm:$0xf] }
  0x2b   : > { %4090 = vmatmul.mubr.msk.bf16.vlgmr.msra.gmra.mrb[0].mxu0 %vm370_vm1, %v4481_v28  ;;  %v672_v24 = vrot.slane %v670_v17, 4  ;;  %v612_v27 = vsel %vm4720_vm4, %v607_v11, %v611_v1  ;;  %v665_v28 = vshll.u32 %v565_v13, 16  ;;  %v626_v29 = vsel %vm4720_vm4, %v621_v14, %v625_v6  ;;  %v3776_v53 = vld [vmem:[%s5414_s1 + $0xa] sm:$0x3]  ;;  %v3761_v58 = vld [vmem:[%s4690_s25 + $0x94] sm:$0x1] }
  0x2c   : > { %4098 = vmatpush3.bf16.msra.mxu0 %v710_v50  ;;  %4093 = vmatprep.mubr.msk.bf16.mxu0 %vm370_vm1, %v4482_v34  ;;  %v649_v25 = vrot.slane %v648_v18, 4  ;;  %v675_v26 = vrot.slane %v673_v22, 5  ;;  %v662_v30 = vor.u32 %v661_v21, %v658_v20  ;;  %v679_v32 = vshll.u32 %v567_v19, 16  ;;  %v4486_v50 = vld [vmem:[%s4690_s25 + $0xb0] ss:$8 sps:$4 sm:$0xff]  }
  0x2d   : > { %4416 = vmatprep.subr.msk.bf16.mxu0 %vm383_vm0, %v3734_v55  ;;  %v640_v33 = vsel %vm4720_vm4, %v635_v23, %v639_v15  ;;  %v3719_v35 = vcombine.low %v612_v27, %v626_v29  ;;  %v667_v36 = vrot.slane %v665_v28, 5  ;;  %v829_v42 = vsel %vm383_vm0, %v3734_v55, 0  ;;  %v3763_v59 = vld [vmem:[%s4690_s25 + $0x9c] sm:$0x1]  ;;  %v4487_v60 = vld [vmem:[%s4690_s25 + $0xc0] ss:$8 sps:$4 sm:$0xff]  }
  0x2e   : > { %v676_v31 = vor.u32 %v675_v26, %v672_v24  ;;  %v654_v34 = vsel %vm4720_vm4, %v649_v25, %v653_v16  ;;  %v663_v38 = vrot.slane %v662_v30, 4  ;;  %v681_v41 = vrot.slane %v679_v32, 5  ;;  %v3764_v61 = vld [vmem:[%s4690_s25 + $0xa0] sm:$0xf]  ;;  %v3766_v3 = vld [vmem:[%s4690_s25 + $0xa8] sm:$0xf] }
  0x2f   : > { %v3720_v37 = vcombine.low %v640_v33, %v654_v34  ;;  %v948_v52 = vsel %vm383_vm0, %v3751_v43, 0  ;;  %v1040_v54 = vshrl.u32 %v3760_v49, 16  ;;  %v1043_v55 = vshll.u32 %v3760_v49, 16  ;;  %v4488_v62 = vld [vmem:[%s4690_s25 + $0xd8] ss:$8 sps:$4 sm:$0xff]  }
  0x30   : > { %v677_v39 = vrot.slane %v676_v31, 4  ;;  %v668_v44 = vsel %vm4720_vm4, %v663_v38, %v667_v36  ;;  %v1054_v56 = vshrl.u32 %v3762_v51, 16  ;;  %v1057_v57 = vshll.u32 %v3762_v51, 16  ;;  %v3768_v8 = vld [vmem:[%s4690_s25 + $0xb0] sm:$0xf] }
  0x31   : > { %v1042_v63 = vrot.slane %v1040_v54, 4  ;;  %v1045_v0 = vrot.slane %v1043_v55, 5  ;;  %v1049_v4 = vshll.u32 %v3761_v58, 16  ;;  %v1068_v6 = vshrl.u32 %v3764_v61, 16  ;;  %v3770_v9 = vld [vmem:[%s4690_s25 + $0xb8] sm:$0xf] }
  0x32   : > { %v682_v45 = vsel %vm4720_vm4, %v677_v39, %v681_v41  ;;  %v1056_v1 = vrot.slane %v1054_v56, 4  ;;  %v1059_v2 = vrot.slane %v1057_v57, 5  ;;  %v1071_v7 = vshll.u32 %v3764_v61, 16  ;;  %v4489_v14 = vld [vmem:[%s4690_s25 + $0xe8] ss:$8 sps:$4 sm:$0xff]  }
  0x33   : > { %4094 = vmatmul.mubr.msk.bf16.gmra.mrb[4].mxu0 %vm370_vm1, %v4483_v5  ;;  %v3721_v46 = vcombine.low %v668_v44, %v682_v45  ;;  %v1063_v5 = vshll.u32 %v3763_v59, 16  ;;  %v1082_v12 = vshrl.u32 %v3766_v3, 16  ;;  %v1085_v13 = vshll.u32 %v3766_v3, 16  ;;  %v3765_v21 = vld [vmem:[%s4690_s25 + $0xa4] sm:$0x1] }
  0x34   : > { %4099 = vmatprep.mubr.msk.bf16.mxu0 %vm370_vm1, %v3718_v10  ;;  %v1046_v10 = vor.u32 %v1045_v0, %v1042_v63  ;;  %v1060_v11 = vor.u32 %v1059_v2, %v1056_v1  ;;  %v1096_v15 = vshrl.u32 %v3768_v8, 16  ;;  %v1099_v16 = vshll.u32 %v3768_v8, 16  ;;  %v3767_v26 = vld [vmem:[%s4690_s25 + $0xac] sm:$0x1]  ;;  %v4490_v30 = vld [vmem:[%s4690_s25 + $0xf8] ss:$8 sps:$4 sm:$0xff]  }
  0x35   : > { %v1110_v17 = vshrl.u32 %v3770_v9, 16  ;;  %v1113_v18 = vshll.u32 %v3770_v9, 16  ;;  %v1051_v19 = vrot.slane %v1049_v4, 5  ;;  %v1065_v20 = vrot.slane %v1063_v5, 5  ;;  %v3793_v31 = vld [vmem:[%s5414_s1 + $0xc] sm:$0x3] }
  0x36   : > { %v1070_v22 = vrot.slane %v1068_v6, 4  ;;  %v1073_v23 = vrot.slane %v1071_v7, 5  ;;  %v1047_v24 = vrot.slane %v1046_v10, 4  ;;  %v1061_v25 = vrot.slane %v1060_v11, 4  ;;  %v3772_v32 = vld [vmem:[%s4690_s25 + $0xc0] sm:$0xf] }
  0x37   : > { %v1084_v27 = vrot.slane %v1082_v12, 4  ;;  %v1087_v28 = vrot.slane %v1085_v13, 5  ;;  %v1178_v29 = vsel %vm383_vm0, %v3776_v53, 0  ;;  %v1098_v33 = vrot.slane %v1096_v15, 4  ;;  %v3769_v41 = vld [vmem:[%s4690_s25 + $0xb4] sm:$0x1] }
  0x38   : > { %v1101_v34 = vrot.slane %v1099_v16, 5  ;;  %v1115_v36 = vrot.slane %v1113_v18, 5  ;;  %v1077_v38 = vshll.u32 %v3765_v21, 16  ;;  %v1091_v39 = vshll.u32 %v3767_v26, 16  ;;  %v4491_v56 = vld [vmem:[%s4690_s25 + $0x108] ss:$8 sps:$4 sm:$0xff]  }
  0x39   : > { %v1066_v44 = vsel %vm4720_vm4, %v1061_v25, %v1065_v20  ;;  %v1074_v45 = vor.u32 %v1073_v23, %v1070_v22  ;;  %v3773_v61 = vld [vmem:[%s4690_s25 + $0xc4] sm:$0x1]  ;;  %v3775_v6 = vld [vmem:[%s4690_s25 + $0xcc] sm:$0x1]  ;;  %v1297_v21 = vsel %vm383_vm0, %v3793_v31, 0 }
  0x3a   : > { %v1102_v51 = vor.u32 %v1101_v34, %v1098_v33  ;;  %v1079_v55 = vrot.slane %v1077_v38, 5  ;;  %v1133_v8 = vshll.u32 %v3773_v61, 16  ;;  %v1147_v12 = vshll.u32 %v3775_v6, 16  ;;  %v3810_v22 = vld [vmem:[%s5414_s1 + $0xe] sm:$0x3] }
  0x3b   : > { %4100 = vmatmul.mubr.msk.bf16.vlgmr.msra.gmra.mrb[0].mxu0 %vm370_vm1, %v3719_v35  ;;  %v1112_v35 = vrot.slane %v1110_v17, 4  ;;  %v1075_v58 = vrot.slane %v1074_v45, 4  ;;  %v4492_v26 = vld [vmem:[%s4690_s25 + $0x8] ss:$8 sps:$4 sm:$0xff]   ;;  %v3820_v38 = vld [vmem:[%s4690_s25 + $0xc] sm:$0x1] }
  0x3c   : > { %4108 = vmatpush3.bf16.msra.mxu0 %v829_v42  ;;  %4103 = vmatprep.mubr.msk.bf16.mxu0 %vm370_vm1, %v3720_v37  ;;  %v3774_v37 = vld [vmem:[%s4690_s25 + $0xc8] sm:$0xf]  ;;  %v3771_v42 = vld [vmem:[%s4690_s25 + $0xbc] sm:$0x1]  ;;  %v1103_v2 = vrot.slane %v1102_v51, 4  ;;  %v1135_v16 = vrot.slane %v1133_v8, 5 }
  0x3d   : > { %4417 = vmatprep.subr.msk.bf16.mxu0 %vm383_vm0, %v3751_v43  ;;  %v1052_v43 = vsel %vm4720_vm4, %v1047_v24, %v1051_v19  ;;  %v1138_v49 = vshrl.u32 %v3774_v37, 16  ;;  %v1119_v54 = vshll.u32 %v3771_v42, 16  ;;  %v1080_v7 = vsel %vm4720_vm4, %v1075_v58, %v1079_v55  ;;  %v3822_v42 = vld [vmem:[%s4690_s25 + $0x14] sm:$0x1]  ;;  %v3823_v45 = vld [vmem:[%s4690_s25 + $0x18] sm:$0xf] }
  0x3e   : > { %v3777_v57 = vcombine.low %v1052_v43, %v1066_v44  ;;  %v1149_v20 = vrot.slane %v1147_v12, 5  ;;  %v1536_v51 = vshrl.u32 %v3823_v45, 16  ;;  %v1539_v55 = vshll.u32 %v3823_v45, 16  ;;  %v4497_v58 = vld [vmem:[%s4690_s25 + $0x60] ss:$8 sps:$4 sm:$0xff]  }
  0x3f   : > { %v1140_v0 = vrot.slane %v1138_v49, 4  ;;  %v1121_v5 = vrot.slane %v1119_v54, 5 }
  0x40   : > { %v1541_v6 = vrot.slane %v1539_v55, 5 }
  0x43   : > { %4104 = vmatmul.mubr.msk.bf16.gmra.mrb[4].mxu0 %vm370_vm1, %v3721_v46  ;;  %v1088_v46 = vor.u32 %v1087_v28, %v1084_v27  ;;  %v4493_v27 = vld [vmem:[%s4690_s25 + $0x18] ss:$8 sps:$4 sm:$0xff]   ;;  %v3819_v28 = vld [vmem:[%s4690_s25 + $0x8] sm:$0xf] }
  0x44   : > { %4109 = vmatprep.mubr.msk.bf16.mxu0 %vm370_vm1, %v4484_v47  ;;  %v1124_v47 = vshrl.u32 %v3772_v32, 16  ;;  %v1508_v33 = vshrl.u32 %v3819_v28, 16  ;;  %v1511_v34 = vshll.u32 %v3819_v28, 16 }
  0x45   : > { %v1089_v59 = vrot.slane %v1088_v46, 4  ;;  %v4496_v46 = vld [vmem:[%s4690_s25 + $0x50] ss:$8 sps:$4 sm:$0xff]  }
  0x4b   : > { %4110 = vmatmul.mubr.msk.bf16.vlgmr.msra.gmra.mrb[0].mxu0 %vm370_vm1, %v4485_v48  ;;  %v1127_v48 = vshll.u32 %v3772_v32, 16  ;;  %v3835_v32 = vld [vmem:[%s5414_s1 + $0x10] sm:$0x3] }
  0x4c   : > { %4118 = vmatpush3.bf16.msra.mxu0 %v948_v52  ;;  %4113 = vmatprep.mubr.msk.bf16.mxu0 %vm370_vm1, %v4486_v50  ;;  %v1141_v50 = vshll.u32 %v3774_v37, 16  ;;  %v1105_v52 = vshll.u32 %v3769_v41, 16  ;;  %v4495_v37 = vld [vmem:[%s4690_s25 + $0x38] ss:$8 sps:$4 sm:$0xff]   ;;  %v1513_v41 = vrot.slane %v1511_v34, 5 }
  0x4d   : > { %4418 = vmatprep.subr.msk.bf16.mxu0 %vm383_vm0, %v3776_v53  ;;  %v1116_v53 = vor.u32 %v1115_v36, %v1112_v35  ;;  %v1129_v63 = vrot.slane %v1127_v48, 5  ;;  %v1517_v48 = vshll.u32 %v3820_v38, 16  ;;  %v4499_v34 = vld [vmem:[%s4690_s25 + $0x80] ss:$8 sps:$4 sm:$0xff]  }
  0x4e   : > { %v1143_v1 = vrot.slane %v1141_v50, 5  ;;  %v1107_v3 = vrot.slane %v1105_v52, 5  ;;  %v1531_v50 = vshll.u32 %v3822_v42, 16  ;;  %v3827_v52 = vld [vmem:[%s4690_s25 + $0x28] sm:$0xf] }
  0x4f   : > { %v1117_v4 = vrot.slane %v1116_v53, 4  ;;  %v3829_v53 = vld [vmem:[%s4690_s25 + $0x30] sm:$0xf] }
  0x50   : > { %v1144_v11 = vor.u32 %v1143_v1, %v1140_v0  ;;  %v1108_v13 = vsel %vm4720_vm4, %v1103_v2, %v1107_v3  ;;  %v1578_v61 = vshrl.u32 %v3829_v53, 16  ;;  %v1519_v0 = vrot.slane %v1517_v48, 5  ;;  %v3824_v2 = vld [vmem:[%s4690_s25 + $0x1c] sm:$0x1] }
  0x51   : > { %v1533_v1 = vrot.slane %v1531_v50, 5  ;;  %v1538_v3 = vrot.slane %v1536_v51, 4 }
  0x52   : > { %v1145_v19 = vrot.slane %v1144_v11, 4  ;;  %v3831_v11 = vld [vmem:[%s4690_s25 + $0x38] sm:$0xf] }
  0x53   : > { %4114 = vmatmul.mubr.msk.bf16.gmra.mrb[4].mxu0 %vm370_vm1, %v4487_v60  ;;  %v1093_v60 = vrot.slane %v1091_v39, 5  ;;  %v1510_v39 = vrot.slane %v1508_v33, 4 }
  0x54   : > { %4119 = vmatprep.mubr.msk.bf16.mxu0 %vm370_vm1, %v4488_v62  ;;  %v1126_v62 = vrot.slane %v1124_v47, 4  ;;  %v1150_v24 = vsel %vm4720_vm4, %v1145_v19, %v1149_v20  ;;  %v3825_v47 = vld [vmem:[%s4690_s25 + $0x20] sm:$0xf]  ;;  %v3828_v19 = vld [vmem:[%s4690_s25 + $0x2c] sm:$0x1] }
  0x55   : > { %v1094_v9 = vsel %vm4720_vm4, %v1089_v59, %v1093_v60  ;;  %v1514_v49 = vor.u32 %v1513_v41, %v1510_v39  ;;  %v1564_v59 = vshrl.u32 %v3827_v52, 16  ;;  %v1567_v60 = vshll.u32 %v3827_v52, 16  ;;  %v3830_v20 = vld [vmem:[%s4690_s25 + $0x34] sm:$0x1]  ;;  %v3832_v39 = vld [vmem:[%s4690_s25 + $0x3c] sm:$0x1] }
  0x56   : > { %v1130_v10 = vor.u32 %v1129_v63, %v1126_v62  ;;  %v3778_v15 = vcombine.low %v1080_v7, %v1094_v9  ;;  %v1581_v62 = vshll.u32 %v3829_v53, 16  ;;  %v1646_v9 = vsel %vm383_vm0, %v3835_v32, 0 }
  0x57   : > { %v1515_v63 = vrot.slane %v1514_v49, 4  ;;  %v1566_v12 = vrot.slane %v1564_v59, 4  ;;  %v3834_v49 = vld [vmem:[%s4690_s25 + $0x44] sm:$0x1]  ;;  %v1601_v51 = vshll.u32 %v3832_v39, 16 }
  0x58   : > { %v1131_v18 = vrot.slane %v1130_v10, 4  ;;  %v4498_v10 = vld [vmem:[%s4690_s25 + $0x70] ss:$8 sps:$4 sm:$0xff]   ;;  %v1615_v55 = vshll.u32 %v3834_v49, 16 }
  0x59   : > { %v1603_v59 = vrot.slane %v1601_v51, 5 }
  0x5a   : > { %v1136_v23 = vsel %vm4720_vm4, %v1131_v18, %v1135_v16  ;;  %v3833_v16 = vld [vmem:[%s4690_s25 + $0x40] sm:$0xf] }
  0x5b   : > { %4120 = vmatmul.mubr.msk.bf16.vlgmr.msra.gmra.mrb[0].mxu0 %vm370_vm1, %v4489_v14  ;;  %v1122_v14 = vsel %vm4720_vm4, %v1117_v4, %v1121_v5  ;;  %v3780_v25 = vcombine.low %v1136_v23, %v1150_v24  ;;  %v3826_v5 = vld [vmem:[%s4690_s25 + $0x24] sm:$0x1]  ;;  %v1542_v23 = vor.u32 %v1541_v6, %v1538_v3  ;;  %v1609_v28 = vshll.u32 %v3833_v16, 16  ;;  %v4919_v6 = vld [vmem:[%s5416_s3] sm:$0xf] }
  0x5c   : > { %4128 = vmatpush3.bf16.msra.mxu0 %v1178_v29  ;;  %4123 = vmatprep.mubr.msk.bf16.mxu0 %vm370_vm1, %v4490_v30  ;;  %v3779_v17 = vcombine.low %v1108_v13, %v1122_v14  ;;  %v4494_v29 = vld [vmem:[%s4690_s25 + $0x28] ss:$8 sps:$4 sm:$0xff]   ;;  %v1569_v13 = vrot.slane %v1567_v60, 5  ;;  %v1580_v14 = vrot.slane %v1578_v61, 4  ;;  %v1559_v18 = vshll.u32 %v3826_v5, 16 }
  0x5d   : > { %4419 = vmatprep.subr.msk.bf16.mxu0 %vm383_vm0, %v3793_v31  ;;  %v3821_v30 = vld [vmem:[%s4690_s25 + $0x10] sm:$0xf]  ;;  %v1416_v31 = vsel %vm383_vm0, %v3810_v22, 0  ;;  %v4580_v3 = vmov 0   ;;  %s3972_s25 = sshll.u32 %s325_s10, 5  ;;  %s5360_s10 = scalar_lea.hbm %s5421_s8, %s3981_s22 }
  0x5e   : > { %v1522_v35 = vshrl.u32 %v3821_v30, 16  ;;  %v1525_v36 = vshll.u32 %v3821_v30, 16  ;;  %v1573_v30 = vshll.u32 %v3828_v19, 16  ;;  %v1561_v38 = vrot.slane %v1559_v18, 5  ;;  %1756 = vst.msk [vmem:[#allocation2 + $0x18] sm:$0xf] %vm1748_vm5, %v4580_v3  ;;  %s5142_s17 = scalar_lea.vmem %s5418_s5, %s3972_s25 }
  0x5f   : > { %1757 = vst.msk [vmem:[#allocation2 + $0x1c] sm:$0x1] %vm1750_vm6, %v4580_v3  ;;  %1751 = vst.msk [vmem:[#allocation2 + $0x4] sm:$0x1] %vm1750_vm6, %v4580_v3 }
  0x60   : > { %v1524_v43 = vrot.slane %v1522_v35, 4  ;;  %v1527_v44 = vrot.slane %v1525_v36, 5  ;;  %v1543_v36 = vrot.slane %v1542_v23, 4  ;;  %1749 = vst.msk [vmem:[#allocation2] sm:$0xf] %vm1748_vm5, %v4580_v3 }
  0x61   : > { %1752 = vst.msk [vmem:[#allocation2 + $0x8] sm:$0xf] %vm1748_vm5, %v4580_v3  ;;  %1754 = vst.msk [vmem:[#allocation2 + $0x10] sm:$0xf] %vm1748_vm5, %v4580_v3 }
  0x62   : > { %v1528_v54 = vor.u32 %v1527_v44, %v1524_v43  ;;  %v1611_v44 = vrot.slane %v1609_v28, 5  ;;  %1753 = vst.msk [vmem:[#allocation2 + $0xc] sm:$0x1] %vm1750_vm6, %v4580_v3  ;;  %1755 = vst.msk [vmem:[#allocation2 + $0x14] sm:$0x1] %vm1750_vm6, %v4580_v3 }
  0x63   : > { %4124 = vmatmul.mubr.msk.bf16.gmra.mrb[4].mxu0 %vm370_vm1, %v4491_v56  ;;  %v1550_v56 = vshrl.u32 %v3825_v47, 16  ;;  %1758 = vst.msk [vmem:[#allocation2 + $0x20] sm:$0xf] %vm1748_vm5, %v4580_v3  ;;  %1760 = vst.msk [vmem:[#allocation2 + $0x28] sm:$0xf] %vm1748_vm5, %v4580_v3 }
  0x64   : > { %4129 = vmatprep.mubr.msk.bf16.mxu0 %vm370_vm1, %v3777_v57  ;;  %v1553_v57 = vshll.u32 %v3825_v47, 16  ;;  %v1529_v4 = vrot.slane %v1528_v54, 4  ;;  %1759 = vst.msk [vmem:[#allocation2 + $0x24] sm:$0x1] %vm1750_vm6, %v4580_v3  ;;  %1761 = vst.msk [vmem:[#allocation2 + $0x2c] sm:$0x1] %vm1750_vm6, %v4580_v3 }
  0x65   : > { %v1552_v7 = vrot.slane %v1550_v56, 4  ;;  %1762 = vst.msk [vmem:[#allocation2 + $0x30] sm:$0xf] %vm1748_vm5, %v4580_v3  ;;  %1764 = vst.msk [vmem:[#allocation2 + $0x38] sm:$0xf] %vm1748_vm5, %v4580_v3 }
  0x66   : > { %v1555_v8 = vrot.slane %v1553_v57, 5  ;;  %1763 = vst.msk [vmem:[#allocation2 + $0x34] sm:$0x1] %vm1750_vm6, %v4580_v3  ;;  %1765 = vst.msk [vmem:[#allocation2 + $0x3c] sm:$0x1] %vm1750_vm6, %v4580_v3 }
  0x67   : > { %1766 = vst.msk [vmem:[#allocation2 + $0x40] sm:$0xf] %vm1748_vm5, %v4580_v3  ;;  %1768 = vst.msk [vmem:[#allocation2 + $0x48] sm:$0xf] %vm1748_vm5, %v4580_v3 }
  0x68   : > { %v1556_v24 = vor.u32 %v1555_v8, %v1552_v7  ;;  %1767 = vst.msk [vmem:[#allocation2 + $0x44] sm:$0x1] %vm1750_vm6, %v4580_v3  ;;  %1769 = vst.msk [vmem:[#allocation2 + $0x4c] sm:$0x1] %vm1750_vm6, %v4580_v3  ;;  %v4923_v7 = vld [vmem:[#allocation2] sm:$0xf] }
  0x69   : > { %v4928_v8 = vld [vmem:[%s5415_s2] ss:$0 sm:$0xff]  ;;  %v1880_v49 = vld [vmem:[#allocation2 + $0xc] sm:$0x1] }
  0x6b   : > { %4130 = vmatmul.mubr.msk.bf16.vlgmr.msra.gmra.mrb[0].mxu0 %vm370_vm1, %v3778_v15  ;;  %v1583_v15 = vrot.slane %v1581_v62, 5 }
  0x6c   : > { %4138 = vmatpush3.bf16.msra.mxu0 %v1297_v21  ;;  %4133 = vmatprep.mubr.msk.bf16.mxu0 %vm370_vm1, %v3779_v17  ;;  %v1545_v17 = vshll.u32 %v3824_v2, 16  ;;  %v1520_v21 = vsel %vm4720_vm4, %v1515_v63, %v1519_v0  ;;  %v1617_v63 = vrot.slane %v1615_v55, 5 }
  0x6d   : > { %4420 = vmatprep.subr.msk.bf16.mxu0 %vm383_vm0, %v3810_v22  ;;  %v1534_v22 = vsel %vm4720_vm4, %v1529_v4, %v1533_v1  ;;  %v3853_v4 = vld [vmem:[%s5416_s3 + $0x4] sm:$0xf] }
  0x6e   : > { %v1547_v33 = vrot.slane %v1545_v17, 5  ;;  %v3836_v35 = vcombine.low %v1520_v21, %v1534_v22  ;;  %v2083_v5 = vsel %vm2081_vm7, %v3853_v4, 0  ;;  %4423 = vmatprep.subr.msk.bf16.mxu1 %vm2081_vm7, %v3853_v4 }
  0x6f   : > { %4268 = vmatpush3.bf16.msra.mxu1 %v2083_v5 }
  0x70   : > { %v1548_v50 = vsel %vm4720_vm4, %v1543_v36, %v1547_v33  ;;  %4424 = vmatprep.subr.msk.bf16.mxu1 %vm2081_vm7, %v4919_v6  ;;  %v1889_v33 = vld [vmem:[#allocation2 + $0x18] sm:$0xf] }
  0x73   : > { %4134 = vmatmul.mubr.msk.bf16.gmra.mrb[4].mxu0 %vm370_vm1, %v3780_v25  ;;  %v1592_v25 = vshrl.u32 %v3831_v11, 16 }
  0x74   : > { %4139 = vmatprep.mubr.msk.bf16.mxu0 %vm370_vm1, %v4492_v26  ;;  %v1595_v26 = vshll.u32 %v3831_v11, 16 }
  0x75   : > { %v1594_v41 = vrot.slane %v1592_v25, 4 }
  0x76   : > { %v1597_v42 = vrot.slane %v1595_v26, 5 }
  0x78   : > { %v1598_v53 = vor.u32 %v1597_v42, %v1594_v41  ;;  %v1874_v42 = vld [vmem:[#allocation2 + $0x8] sm:$0xf] }
  0x7a   : > { %v1599_v61 = vrot.slane %v1598_v53, 4 }
  0x7b   : > { %4140 = vmatmul.mubr.msk.bf16.vlgmr.msra.gmra.mrb[0].mxu0 %vm370_vm1, %v4493_v27  ;;  %v1606_v27 = vshrl.u32 %v3833_v16, 16 }
  0x7c   : > { %4148 = vmatpush3.bf16.msra.mxu0 %v1416_v31  ;;  %4143 = vmatprep.mubr.msk.bf16.mxu0 %vm370_vm1, %v4494_v29  ;;  %v1570_v29 = vor.u32 %v1569_v13, %v1566_v12  ;;  %v1584_v31 = vor.u32 %v1583_v15, %v1580_v14  ;;  %v1604_v0 = vsel %vm4720_vm4, %v1599_v61, %v1603_v59 }
  0x7d   : > { %4421 = vmatprep.subr.msk.bf16.mxu0 %vm383_vm0, %v3835_v32  ;;  %v1587_v32 = vshll.u32 %v3830_v20, 16  ;;  %v1608_v43 = vrot.slane %v1606_v27, 4  ;;  %v4940_v27 = vld [vmem:[#allocation2 + $0x4] sm:$0x1] }
  0x7e   : > { %v1571_v45 = vrot.slane %v1570_v29, 4  ;;  %v1585_v47 = vrot.slane %v1584_v31, 4  ;;  %v1952_v31 = vshll.u32 %v4940_v27, 16 }
  0x7f   : > { %v1589_v48 = vrot.slane %v1587_v32, 5  ;;  %v1612_v54 = vor.u32 %v1611_v44, %v1608_v43 }
  0x81   : > { %v1590_v57 = vsel %vm4720_vm4, %v1585_v47, %v1589_v48  ;;  %v1613_v62 = vrot.slane %v1612_v54, 4 }
  0x83   : > { %4144 = vmatmul.mubr.msk.bf16.gmra.mrb[4].mxu0 %vm370_vm1, %v4495_v37  ;;  %v1557_v37 = vrot.slane %v1556_v24, 4  ;;  %v1618_v1 = vsel %vm4720_vm4, %v1613_v62, %v1617_v63  ;;  %v1898_v62 = vld [vmem:[#allocation2 + $0x24] sm:$0x1] }
  0x84   : > { %4149 = vmatprep.mubr.msk.bf16.mxu0 %vm370_vm1, %v4496_v46  ;;  %v1575_v46 = vrot.slane %v1573_v30, 5  ;;  %v3839_v2 = vcombine.low %v1604_v0, %v1618_v1 }
  0x85   : > { %v1562_v52 = vsel %vm4720_vm4, %v1557_v37, %v1561_v38 }
  0x86   : > { %v1576_v56 = vsel %vm4720_vm4, %v1571_v45, %v1575_v46 }
  0x87   : > { %v3838_v60 = vcombine.low %v1576_v56, %v1590_v57  ;;  %v1895_v57 = vld [vmem:[#allocation2 + $0x20] sm:$0xf] }
  0x8b   : > { %4150 = vmatmul.mubr.msk.bf16.vlgmr.msra.gmra.mrb[0].mxu0 %vm370_vm1, %v4497_v58  ;;  %v3837_v58 = vcombine.low %v1548_v50, %v1562_v52 }
  0x8c   : > { %4158 = vmatpush3.bf16.msra.mxu0 %v1646_v9  ;;  %4153 = vmatprep.mubr.msk.bf16.mxu0 %vm370_vm1, %v4498_v10  ;;  %v1943_v9 = vshrl.u32 %v4923_v7, 16  ;;  %v1946_v10 = vshll.u32 %v4923_v7, 16 }
  0x8d   : > { %4422 = vmatprep.subr.msk.bf16.mxu0 %vm2081_vm7, %v3853_v4 }
  0x8e   : > { %v4935_v19 = vrot.slane %v1943_v9, 4  ;;  %v4937_v20 = vrot.slane %v1946_v10, 5  ;;  %v1886_v9 = vld [vmem:[#allocation2 + $0x14] sm:$0x1] }
  0x90   : > { %v1949_v30 = vor.u32 %v4937_v20, %v4935_v19 }
  0x93   : > { %4154 = vmatmul.mubr.msk.bf16.gmra.mrb[4].mxu0 %vm370_vm1, %v4499_v34  ;;  %v1892_v34 = vld [vmem:[#allocation2 + $0x1c] sm:$0x1] }
  0x94   : > { %4159 = vmatprep.mubr.msk.bf16.mxu0 %vm370_vm1, %v3836_v35 }
  0x9b   : > { %4160 = vmatmul.mubr.msk.bf16.vlgmr.msra.gmra.mrb[0].mxu0 %vm370_vm1, %v3837_v58 }
  0x9c   : > { %4163 = vmatprep.mubr.msk.bf16.mxu0 %vm370_vm1, %v3838_v60  ;;  %4168 = vmatpush3.bf16.msra.mxu0 %v2083_v5  ;;  %v1883_v5 = vld [vmem:[#allocation2 + $0x10] sm:$0xf] }
  0xa3   : > { %4164 = vmatmul.mubr.msk.bf16.gmra.mrb[4].mxu0 %vm370_vm1, %v3839_v2 }
 0x16e   : > { %v4161_v11 = vpop.f32.mrb[0].mxu0 }
 0x16f   : > { %v1730_v12 = vadd.f32 %v4161_v11, %v4928_v8  ;;  %v1682_v13 = vpop.f32.mrb[1].mxu0 }
 0x170   : > { %v1728_v14 = vadd.f32 %v4928_v8, %v1682_v13  ;;  %v4162_v15 = vpop.f32.mrb[2].mxu0 }
 0x171   : > { %v1738_v16 = vmax.f32 %v1730_v12, 0.0  ;;  %v1731_v17 = vadd.f32 %v4162_v15, %v4928_v8  ;;  %v1685_v18 = vpop.f32.mrb[3].mxu0 }
 0x172   : > { %v1736_v21 = vmax.f32 %v1728_v14, 0.0  ;;  %v1729_v22 = vadd.f32 %v4928_v8, %v1685_v18 }
 0x173   : > { %v3975_v23 = vpack.c.bf16 %v1738_v16, %v1738_v16  ;;  %v1739_v24 = vmax.f32 %v1731_v17, 0.0 }
 0x174   : > { %v3973_v25 = vpack.c.bf16 %v1736_v21, %v1736_v21  ;;  %v1737_v26 = vmax.f32 %v1729_v22, 0.0 }
 0x175   : > { %v1807_v28 = vshrl.u32 %v3975_v23, 16  ;;  %v3976_v29 = vpack.c.bf16 %v1739_v24, %v1739_v24  ;;  %v1810_v32 = vshll.u32 %v3975_v23, 16 }
 0x176   : > { %v1791_v35 = vshrl.u32 %v3973_v25, 16  ;;  %v1794_v36 = vshll.u32 %v3973_v25, 16  ;;  %v3974_v37 = vpack.c.bf16 %v1737_v26, %v1737_v26  ;;  %v4165_v38 = vpop.f32.mrb[4].mxu0  ;;  %v1913_v26 = vld [vmem:[#allocation2 + $0x38] sm:$0xf] }
 0x177   : > { %v1809_v39 = vrot.slane %v1807_v28, 7  ;;  %v1815_v43 = vshrl.u32 %v3976_v29, 16  ;;  %v1818_v44 = vshll.u32 %v3976_v29, 16  ;;  %v1734_v45 = vadd.f32 %v4165_v38, %v4928_v8  ;;  %v1698_v46 = vpop.f32.mrb[5].mxu0  ;;  %v1904_v38 = vld [vmem:[#allocation2 + $0x2c] sm:$0x1] }
 0x178   : > { %v1793_v48 = vrot.slane %v1791_v35, 7  ;;  %v1799_v50 = vshrl.u32 %v3974_v37, 16  ;;  %v1802_v51 = vshll.u32 %v3974_v37, 16  ;;  %v1732_v52 = vadd.f32 %v4928_v8, %v1698_v46  ;;  %v4166_v53 = vpop.f32.mrb[6].mxu0  ;;  %v1901_v37 = vld [vmem:[#allocation2 + $0x28] sm:$0xf] }
 0x179   : > { %v1812_v54 = vor.u32 %v1810_v32, %v1809_v39  ;;  %v1813_v55 = vrot.slane %v1809_v39, 4  ;;  %v1817_v56 = vrot.slane %v1815_v43, 7  ;;  %v1742_v58 = vmax.f32 %v1734_v45, 0.0  ;;  %v1701_v59 = vpop.f32.mrb[7].mxu0 }
 0x17a   : > { %v1796_v60 = vor.u32 %v1794_v36, %v1793_v48  ;;  %v1797_v61 = vrot.slane %v1793_v48, 4  ;;  %v1801_v63 = vrot.slane %v1799_v50, 7  ;;  %v1740_v0 = vmax.f32 %v1732_v52, 0.0 }
 0x17b   : > { %v1890_v1 = vsel %vm4947_vm10, %v1812_v54, %v1889_v33  ;;  %v1893_v2 = vsel %vm4954_vm11, %v1813_v55, %v1892_v34  ;;  %v1820_v3 = vor.u32 %v1818_v44, %v1817_v56  ;;  %v1821_v4 = vrot.slane %v1817_v56, 4  ;;  %v1916_v34 = vld [vmem:[#allocation2 + $0x3c] sm:$0x1]  ;;  %v1919_v55 = vld [vmem:[#allocation2 + $0x40] sm:$0xf] }
 0x17c   : > { %1891 = vst [vmem:[#allocation2 + $0x18] sm:$0xf] %v1890_v1  ;;  %1894 = vst [vmem:[#allocation2 + $0x1c] sm:$0x1] %v1893_v2  ;;  %v1875_v10 = vsel %vm4947_vm10, %v1796_v60, %v1874_v42  ;;  %v1881_v11 = vsel %vm4954_vm11, %v1797_v61, %v1880_v49  ;;  %v1804_v12 = vor.u32 %v1802_v51, %v1801_v63  ;;  %v1805_v13 = vrot.slane %v1801_v63, 4 }
 0x17d   : > { %1876 = vst [vmem:[#allocation2 + $0x8] sm:$0xf] %v1875_v10  ;;  %1882 = vst [vmem:[#allocation2 + $0xc] sm:$0x1] %v1881_v11  ;;  %v1896_v14 = vsel %vm4947_vm10, %v1820_v3, %v1895_v57  ;;  %v1899_v15 = vsel %vm4954_vm11, %v1821_v4, %v1898_v62  ;;  %v3979_v16 = vpack.c.bf16 %v1742_v58, %v1742_v58  ;;  %v4984_v43 = vrot.slane %v1952_v31, 5 }
 0x17e   : > { %v3977_v17 = vpack.c.bf16 %v1740_v0, %v1740_v0  ;;  %1897 = vst [vmem:[#allocation2 + $0x20] sm:$0xf] %v1896_v14  ;;  %1900 = vst [vmem:[#allocation2 + $0x24] sm:$0x1] %v1899_v15  ;;  %v1884_v18 = vsel %vm4947_vm10, %v1804_v12, %v1883_v5  ;;  %v1887_v21 = vsel %vm4954_vm11, %v1805_v13, %v1886_v9  ;;  %v1922_v56 = vld [vmem:[#allocation2 + $0x44] sm:$0x1] }
 0x17f   : > { %v1735_v22 = vadd.f32 %v4166_v53, %v4928_v8  ;;  %v1733_v23 = vadd.f32 %v4928_v8, %v1701_v59  ;;  %1885 = vst [vmem:[#allocation2 + $0x10] sm:$0xf] %v1884_v18  ;;  %1888 = vst [vmem:[#allocation2 + $0x14] sm:$0x1] %v1887_v21  ;;  %v1839_v24 = vshrl.u32 %v3979_v16, 16  ;;  %v1842_v33 = vshll.u32 %v3979_v16, 16 }
 0x180   : > { %v1823_v25 = vshrl.u32 %v3977_v17, 16  ;;  %v1826_v36 = vshll.u32 %v3977_v17, 16  ;;  %v4980_v8 = vrot.slane %v1949_v30, 4  ;;  %v1907_v57 = vld [vmem:[#allocation2 + $0x30] sm:$0xf] }
 0x181   : > { %v1743_v28 = vmax.f32 %v1735_v22, 0.0  ;;  %v1741_v29 = vmax.f32 %v1733_v23, 0.0  ;;  %v1841_v32 = vrot.slane %v1839_v24, 7  ;;  %v1910_v0 = vld [vmem:[#allocation2 + $0x34] sm:$0x1] }
 0x182   : > { %v1825_v35 = vrot.slane %v1823_v25, 7  ;;  %v1955_v24 = vsel %vm4720_vm4, %v4980_v8, %v4984_v43 }
 0x183   : > { %v3980_v39 = vpack.c.bf16 %v1743_v28, %v1743_v28  ;;  %v3978_v42 = vpack.c.bf16 %v1741_v29, %v1741_v29  ;;  %v1844_v44 = vor.u32 %v1842_v33, %v1841_v32  ;;  %v1845_v45 = vrot.slane %v1841_v32, 4  ;;  %v4986_v49 = vld [vmem:[#allocation2 + $0x18] sm:$0xf]  ;;  %v5020_v23 = vld [vmem:[#allocation2 + $0x1c] sm:$0x1] }
 0x184   : > { %v1828_v46 = vor.u32 %v1826_v36, %v1825_v35  ;;  %v1829_v48 = vrot.slane %v1825_v35, 4  ;;  %v4988_v54 = vld [vmem:[#allocation2 + $0x8] sm:$0xf]  ;;  %v4998_v58 = vld [vmem:[#allocation2 + $0xc] sm:$0x1]  ;;  %v1985_v3 = vshrl.u32 %v4986_v49, 16 }
 0x185   : > { %v1847_v50 = vshrl.u32 %v3980_v39, 16  ;;  %v1850_v51 = vshll.u32 %v3980_v39, 16  ;;  %v1831_v52 = vshrl.u32 %v3978_v42, 16  ;;  %v1834_v53 = vshll.u32 %v3978_v42, 16  ;;  %v5010_v16 = vld [vmem:[#allocation2 + $0x20] sm:$0xf] }
 0x186   : > { %v1914_v19 = vsel %vm4947_vm10, %v1844_v44, %v1913_v26  ;;  %v1917_v20 = vsel %vm4954_vm11, %v1845_v45, %v1916_v34  ;;  %v1902_v30 = vsel %vm4947_vm10, %v1828_v46, %v1901_v37  ;;  %v1905_v31 = vsel %vm4954_vm11, %v1829_v48, %v1904_v38  ;;  %v5002_v63 = vld [vmem:[#allocation2 + $0x10] sm:$0xf]  ;;  %v5007_v11 = vld [vmem:[#allocation2 + $0x14] sm:$0x1]  ;;  %v5027_v41 = vld [vmem:[#allocation2 + $0x24] sm:$0x1] }
 0x187   : > { %1915 = vst [vmem:[#allocation2 + $0x38] sm:$0xf] %v1914_v19  ;;  %1918 = vst [vmem:[#allocation2 + $0x3c] sm:$0x1] %v1917_v20  ;;  %v1849_v59 = vrot.slane %v1847_v50, 7  ;;  %v1833_v60 = vrot.slane %v1831_v52, 7 }
 0x188   : > { %1903 = vst [vmem:[#allocation2 + $0x28] sm:$0xf] %v1902_v30  ;;  %1906 = vst [vmem:[#allocation2 + $0x2c] sm:$0x1] %v1905_v31  ;;  %v1957_v61 = vshrl.u32 %v4988_v54, 16  ;;  %v1960_v62 = vshll.u32 %v4988_v54, 16 }
 0x189   : > { %v1971_v1 = vshrl.u32 %v5002_v63, 16  ;;  %v1974_v2 = vshll.u32 %v5002_v63, 16  ;;  %v1852_v4 = vor.u32 %v1850_v51, %v1849_v59  ;;  %v1853_v5 = vrot.slane %v1849_v59, 4 }
 0x18a   : > { %v1836_v9 = vor.u32 %v1834_v53, %v1833_v60  ;;  %v1837_v10 = vrot.slane %v1833_v60, 4  ;;  %v1959_v12 = vrot.slane %v1957_v61, 4  ;;  %v1962_v13 = vrot.slane %v1960_v62, 5 }
 0x18b   : > { %v1966_v14 = vshll.u32 %v4998_v58, 16  ;;  %v1973_v15 = vrot.slane %v1971_v1, 4  ;;  %v1920_v17 = vsel %vm4947_vm10, %v1852_v4, %v1919_v55  ;;  %v1923_v18 = vsel %vm4954_vm11, %v1853_v5, %v1922_v56 }
 0x18c   : > { %v1908_v21 = vsel %vm4947_vm10, %v1836_v9, %v1907_v57  ;;  %v1911_v22 = vsel %vm4954_vm11, %v1837_v10, %v1910_v0  ;;  %1921 = vst [vmem:[#allocation2 + $0x40] sm:$0xf] %v1920_v17  ;;  %1924 = vst [vmem:[#allocation2 + $0x44] sm:$0x1] %v1923_v18  ;;  %v1963_v25 = vor.u32 %v1962_v13, %v1959_v12  ;;  %v1976_v26 = vrot.slane %v1974_v2, 5 }
 0x18d   : > { %1909 = vst [vmem:[#allocation2 + $0x30] sm:$0xf] %v1908_v21  ;;  %1912 = vst [vmem:[#allocation2 + $0x34] sm:$0x1] %v1911_v22  ;;  %v1980_v28 = vshll.u32 %v5007_v11, 16  ;;  %v1987_v29 = vrot.slane %v1985_v3, 4 }
 0x18e   : > { %v1988_v47 = vshll.u32 %v4986_v49, 16  ;;  %v1999_v32 = vshrl.u32 %v5010_v16, 16  ;;  %v2002_v33 = vshll.u32 %v5010_v16, 16  ;;  %v1964_v34 = vrot.slane %v1963_v25, 4  ;;  %v5042_v31 = vld [vmem:[#allocation2 + $0x38] sm:$0xf] }
 0x18f   : > { %v1968_v35 = vrot.slane %v1966_v14, 5  ;;  %v1977_v36 = vor.u32 %v1976_v26, %v1973_v15  ;;  %v1994_v37 = vshll.u32 %v5020_v23, 16  ;;  %v5033_v38 = vld [vmem:[#allocation2 + $0x28] sm:$0xf]  ;;  %v1982_v39 = vrot.slane %v1980_v28, 5 }
 0x190   : > { %v1990_v42 = vrot.slane %v1988_v47, 5  ;;  %v2001_v8 = vrot.slane %v1999_v32, 4  ;;  %v2004_v43 = vrot.slane %v2002_v33, 5  ;;  %v5037_v46 = vld [vmem:[#allocation2 + $0x2c] sm:$0x1]  ;;  %v2008_v48 = vshll.u32 %v5027_v41, 16 }
 0x191   : > { %v1969_v44 = vsel %vm4720_vm4, %v1964_v34, %v1968_v35  ;;  %v1978_v45 = vrot.slane %v1977_v36, 4  ;;  %v2013_v50 = vshrl.u32 %v5033_v38, 16  ;;  %v2016_v19 = vshll.u32 %v5033_v38, 16  ;;  %v5056_v5 = vld [vmem:[#allocation2 + $0x3c] sm:$0x1] }
 0x192   : > { %v3854_v51 = vcombine.low %v1955_v24, %v1969_v44  ;;  %v1991_v52 = vor.u32 %v1990_v42, %v1987_v29  ;;  %v2005_v53 = vor.u32 %v2004_v43, %v2001_v8  ;;  %v1996_v20 = vrot.slane %v1994_v37, 5  ;;  %v3878_v43 = vld [vmem:[%s5416_s3 + $0x8] sm:$0xf]  ;;  %v2250_v44 = vld [vmem:[#allocation2] sm:$0xe] }
 0x193   : > { %v2015_v30 = vrot.slane %v2013_v50, 4  ;;  %v1983_v55 = vsel %vm4720_vm4, %v1978_v45, %v1982_v39  ;;  %v2018_v57 = vrot.slane %v2016_v19, 5  ;;  %v2022_v59 = vshll.u32 %v5037_v46, 16  ;;  %v2251_v45 = vld [vmem:[#allocation2 + $0x8] sm:$0xe] }
 0x194   : > { %4169 = vmatprep.mubr.msk.bf16.mxu0 %vm2068_vm12, %v3854_v51  ;;  %v1992_v56 = vrot.slane %v1991_v52, 4  ;;  %v5048_v60 = vld [vmem:[#allocation2 + $0x30] sm:$0xf]  ;;  %v5050_v61 = vld [vmem:[#allocation2 + $0x34] sm:$0x1]  ;;  %v2006_v2 = vrot.slane %v2005_v53, 4  ;;  %v3862_v8 = vcombine.low %v4923_v7, %v4988_v54  ;;  %v3864_v7 = vcombine.low %v5010_v16, %v5033_v38 }
 0x195   : > { %v2027_v62 = vshrl.u32 %v5048_v60, 16  ;;  %v2030_v0 = vshll.u32 %v5048_v60, 16  ;;  %v2010_v3 = vrot.slane %v2008_v48, 5  ;;  %v2019_v4 = vor.u32 %v2018_v57, %v2015_v30  ;;  %v3887_v54 = vld [vmem:[%s5416_s3 + $0xc] sm:$0xf] }
 0x196   : > { %v1997_v1 = vsel %vm4720_vm4, %v1992_v56, %v1996_v20  ;;  %v2041_v13 = vshrl.u32 %v5042_v31, 16  ;;  %v2024_v15 = vrot.slane %v2022_v59, 5  ;;  %v2036_v17 = vshll.u32 %v5050_v61, 16  ;;  %v2252_v38 = vld [vmem:[#allocation2 + $0x10] sm:$0xe] }
 0x197   : > { %v3855_v9 = vcombine.low %v1983_v55, %v1997_v1  ;;  %v2029_v10 = vrot.slane %v2027_v62, 4  ;;  %v2032_v12 = vrot.slane %v2030_v0, 5  ;;  %v2020_v14 = vrot.slane %v2019_v4, 4  ;;  %v2253_v19 = vld [vmem:[#allocation2 + $0x18] sm:$0xe] }
 0x198   : > { %v2044_v18 = vshll.u32 %v5042_v31, 16  ;;  %v2043_v22 = vrot.slane %v2041_v13, 4  ;;  %v2011_v24 = vsel %vm4720_vm4, %v2006_v2, %v2010_v3  ;;  %v2050_v28 = vshll.u32 %v5056_v5, 16  ;;  %v2254_v56 = vld [vmem:[#allocation2 + $0x20] sm:$0xe] }
 0x199   : > { %4170 = vmatmul.mubr.msk.bf16.vlgmr.msra.gmra.mrb[8].mxu0 %vm2068_vm12, %v3855_v9  ;;  %v2033_v21 = vor.u32 %v2032_v12, %v2029_v10  ;;  %v2025_v25 = vsel %vm4720_vm4, %v2020_v14, %v2024_v15  ;;  %v2038_v32 = vrot.slane %v2036_v17, 5  ;;  %v2183_v42 = vsel %vm2081_vm7, %v4919_v6, 0  ;;  %v2256_v2 = vld [vmem:[#allocation2 + $0x30] sm:$0xe]  ;;  %v2257_v9 = vld [vmem:[#allocation2 + $0x38] sm:$0xe] }
 0x19a   : > { %v2046_v26 = vrot.slane %v2044_v18, 5  ;;  %v3856_v29 = vcombine.low %v2011_v24, %v2025_v25  ;;  %v2052_v36 = vrot.slane %v2050_v28, 5  ;;  %v3863_v48 = vcombine.low %v5002_v63, %v4986_v49  ;;  %v3896_v13 = vld [vmem:[%s5416_s3 + $0x10] sm:$0xf] }
 0x19b   : > { %v2034_v47 = vrot.slane %v2033_v21, 4  ;;  %v2336_v6 = vsel %vm2081_vm7, %v3878_v43, 0  ;;  %v3870_v50 = vrot.slane %v2250_v44, 9  ;;  %v2279_v51 = vrot.slane %v4940_v27, 5  ;;  %v2255_v27 = vld [vmem:[#allocation2 + $0x28] sm:$0xe] }
 0x19c   : > { %v2047_v33 = vor.u32 %v2046_v26, %v2043_v22  ;;  %4173 = vmatprep.mubr.msk.bf16.mxu1 %vm2068_vm12, %v3856_v29  ;;  %v3871_v52 = vrot.slane %v2251_v45, 9  ;;  %v2283_v53 = vrot.slane %v4998_v58, 5  ;;  %v3865_v58 = vcombine.low %v5048_v60, %v5042_v31  ;;  %v2531_v17 = vld [vmem:[#allocation2 + $0x10] sm:$0xf]  ;;  %v4505_v44 = vld [vmem:[#allocation2 + $0x18] ss:$8 sps:$4 sm:$0xff]  }
 0x19d   : > { %v2039_v34 = vsel %vm4720_vm4, %v2034_v47, %v2038_v32  ;;  %v2280_v63 = vsel %vm5094_vm15, %v3870_v50, %v2279_v51  ;;  %v3872_v30 = vrot.slane %v2252_v38, 9  ;;  %v2287_v55 = vrot.slane %v5007_v11, 5  ;;  %v4504_v29 = vld [vmem:[#allocation2 + $0x8] ss:$8 sps:$4 sm:$0xff]   ;;  %v2535_v32 = vld [vmem:[#allocation2 + $0x20] sm:$0xf] }
 0x19e   : > { %v2048_v35 = vrot.slane %v2047_v33, 4  ;;  %v2284_v16 = vsel %vm5094_vm15, %v3871_v52, %v2283_v53  ;;  %v2299_v57 = vrot.slane %v5037_v46, 5  ;;  %v3875_v59 = vrot.slane %v2255_v27, 9  ;;  %v5144_v45 = vld [vmem:[#allocation2 + $0xc] sm:$0x1] }
 0x19f   : > { %v3879_v20 = vcombine.low %v2280_v63, %v2284_v16  ;;  %v3873_v62 = vrot.slane %v2253_v19, 9  ;;  %v2291_v0 = vrot.slane %v5020_v23, 5  ;;  %v2295_v1 = vrot.slane %v5027_v41, 5  ;;  %v5149_v50 = vld [vmem:[%s5416_s3 + $0x14] sm:$0xf] }
 0x1a0   : > { %v2053_v37 = vsel %vm4720_vm4, %v2048_v35, %v2052_v36  ;;  %v3874_v31 = vrot.slane %v2254_v56, 9  ;;  %v2288_v60 = vsel %vm5094_vm15, %v3872_v30, %v2287_v55  ;;  %v2300_v11 = vsel %vm5094_vm15, %v3875_v59, %v2299_v57  ;;  %v2539_v35 = vld [vmem:[#allocation2 + $0x30] sm:$0xf]  ;;  %v2543_v19 = vld [vmem:[#allocation2 + $0x40] sm:$0xf] }
 0x1a1   : > { %v3857_v39 = vcombine.low %v2039_v34, %v2053_v37  ;;  %v2292_v46 = vsel %vm5094_vm15, %v3873_v62, %v2291_v0  ;;  %v2454_v4 = vsel %vm2081_vm7, %v3887_v54, 0  ;;  %v3876_v10 = vrot.slane %v2256_v2, 9  ;;  %v5137_v34 = vld [vmem:[#allocation2 + $0x14] sm:$0x1]  ;;  %v5155_v57 = vld [vmem:[#allocation2 + $0x24] sm:$0x1] }
 0x1a2   : > { %v3880_v3 = vcombine.low %v2288_v60, %v2292_v46  ;;  %v2296_v23 = vsel %vm5094_vm15, %v3874_v31, %v2295_v1  ;;  %v2303_v12 = vrot.slane %v5050_v61, 5  ;;  %v3877_v14 = vrot.slane %v2257_v9, 9  ;;  %v2529_v61 = vld [vmem:[#allocation2 + $0x8] sm:$0xf]  ;;  %v5159_v2 = vld [vmem:[#allocation2 + $0x1c] sm:$0x1] }
 0x1a3   : > { %4174 = vmatmul.mubr.msk.bf16.vlgmr.msra.gmra.mrb[0].mxu1 %vm2068_vm12, %v3857_v39  ;;  %v3881_v41 = vcombine.low %v2296_v23, %v2300_v11  ;;  %v2307_v15 = vrot.slane %v5056_v5, 5  ;;  %v2560_v21 = vshrl.u32 %v2531_v17, 16  ;;  %v2563_v22 = vshll.u32 %v2531_v17, 16  ;;  %v2533_v39 = vld [vmem:[#allocation2 + $0x18] sm:$0xf] }
 0x1a4   : > { %4178 = vmatpush3.bf16.msra.mxu1 %v2183_v42  ;;  %4179 = vmatprep.mubr.msk.bf16.mxu1 %vm2068_vm12, %v3862_v8  ;;  %v2304_v18 = vsel %vm5094_vm15, %v3876_v10, %v2303_v12  ;;  %v2546_v26 = vshrl.u32 %v2529_v61, 16  ;;  %v2549_v28 = vshll.u32 %v2529_v61, 16  ;;  %v2684_v33 = vsel %vm2081_vm7, %v3896_v13, 0  ;;  %v2541_v11 = vld [vmem:[#allocation2 + $0x38] sm:$0xf] }
 0x1a5   : > { %4425 = vmatprep.subr.msk.bf16.mxu1 %vm2081_vm7, %v3878_v43  ;;  %v2308_v24 = vsel %vm5094_vm15, %v3877_v14, %v2307_v15  ;;  %v2562_v5 = vrot.slane %v2560_v21, 4  ;;  %v2565_v47 = vrot.slane %v2563_v22, 5  ;;  %v2588_v42 = vshrl.u32 %v2535_v32, 16  ;;  %v2537_v43 = vld [vmem:[#allocation2 + $0x28] sm:$0xf] }
 0x1a6   : > { %v3882_v25 = vcombine.low %v2304_v18, %v2308_v24  ;;  %v2548_v36 = vrot.slane %v2546_v26, 4  ;;  %v2551_v37 = vrot.slane %v2549_v28, 5  ;;  %v2591_v8 = vshll.u32 %v2535_v32, 16  ;;  %v5166_v14 = vld [vmem:[#allocation2 + $0x2c] sm:$0x1] }
 0x1a7   : > { %v2574_v51 = vshrl.u32 %v2533_v39, 16  ;;  %v2577_v52 = vshll.u32 %v2533_v39, 16  ;;  %v2569_v63 = vshll.u32 %v5137_v34, 16  ;;  %v2602_v16 = vshrl.u32 %v2537_v43, 16  ;;  %v4507_v18 = vld [vmem:[#allocation2 + $0x38] ss:$8 sps:$4 sm:$0xff]  }
 0x1a8   : > { %v2552_v53 = vor.u32 %v2551_v37, %v2548_v36  ;;  %v2605_v38 = vshll.u32 %v2537_v43, 16  ;;  %v2590_v27 = vrot.slane %v2588_v42, 4  ;;  %v2647_v23 = vshll.u32 %v2543_v19, 16  ;;  %v5175_v42 = vld [vmem:[#allocation2 + $0x44] sm:$0x1] }
 0x1a9   : > { %v2576_v59 = vrot.slane %v2574_v51, 4  ;;  %v2579_v62 = vrot.slane %v2577_v52, 5  ;;  %v2571_v1 = vrot.slane %v2569_v63, 5  ;;  %v2604_v31 = vrot.slane %v2602_v16, 4 }
 0x1aa   : > { %v2553_v0 = vrot.slane %v2552_v53, 4  ;;  %v2607_v60 = vrot.slane %v2605_v38, 5  ;;  %v2630_v15 = vshrl.u32 %v2541_v11, 16  ;;  %v2633_v17 = vshll.u32 %v2541_v11, 16  ;;  %v2760_v53 = vld [vmem:[#allocation2 + $0x10] sm:$0xe] }
 0x1ab   : > { %4180 = vmatmul.mubr.msk.bf16.vlgmr.msra.gmra.mrb[4].mxu1 %vm2068_vm12, %v3863_v48  ;;  %v2566_v48 = vor.u32 %v2565_v47, %v2562_v5  ;;  %v2580_v12 = vor.u32 %v2579_v62, %v2576_v59  ;;  %v2583_v21 = vshll.u32 %v5159_v2, 16  ;;  %v2611_v5 = vshll.u32 %v5166_v14, 16  ;;  %v2762_v11 = vld [vmem:[#allocation2 + $0x20] sm:$0xe] }
 0x1ac   : > { %4188 = vmatpush3.bf16.msra.mxu1 %v2336_v6  ;;  %4183 = vmatprep.mubr.msk.bf16.mxu1 %vm2068_vm12, %v3864_v7  ;;  %v2616_v6 = vshrl.u32 %v2539_v35, 16  ;;  %v2619_v7 = vshll.u32 %v2539_v35, 16  ;;  %v2608_v22 = vor.u32 %v2607_v60, %v2604_v31  ;;  %v2632_v35 = vrot.slane %v2630_v15, 4 }
 0x1ad   : > { %4426 = vmatprep.subr.msk.bf16.mxu1 %vm2081_vm7, %v3887_v54  ;;  %v4506_v54 = vld [vmem:[#allocation2 + $0x28] ss:$8 sps:$4 sm:$0xff]   ;;  %v2567_v30 = vrot.slane %v2566_v48, 4  ;;  %v2581_v32 = vrot.slane %v2580_v12, 4  ;;  %v2635_v36 = vrot.slane %v2633_v17, 5  ;;  %v2613_v48 = vrot.slane %v2611_v5, 5 }
 0x1ae   : > { %v2618_v55 = vrot.slane %v2616_v6, 4  ;;  %v2621_v56 = vrot.slane %v2619_v7, 5  ;;  %v2609_v37 = vrot.slane %v2608_v22, 4  ;;  %v5181_v7 = vld [vmem:[#allocation2 + $0x3c] sm:$0x1]  ;;  %v2653_v52 = vshll.u32 %v5175_v42, 16 }
 0x1af   : > { %v2636_v51 = vor.u32 %v2635_v36, %v2632_v35  ;;  %v2842_v16 = vsel %vm2081_vm7, %v5149_v50, 0  ;;  %v2763_v12 = vld [vmem:[#allocation2 + $0x28] sm:$0xe]  ;;  %v3036_v35 = vld [vmem:[#allocation2 + $0x10] sm:$0xf] }
 0x1b0   : > { %v2622_v10 = vor.u32 %v2621_v56, %v2618_v55  ;;  %v2614_v38 = vsel %vm4720_vm4, %v2609_v37, %v2613_v48  ;;  %v3906_v55 = vrot.slane %v2760_v53, 9  ;;  %v2789_v56 = vrot.slane %v5137_v34, 5  ;;  %v3038_v37 = vld [vmem:[#allocation2 + $0x18] sm:$0xf] }
 0x1b1   : > { %v2655_v59 = vrot.slane %v2653_v52, 5  ;;  %v3070_v48 = vshll.u32 %v3038_v37, 16  ;;  %v3044_v52 = vld [vmem:[#allocation2 + $0x30] sm:$0xf] }
 0x1b2   : > { %v2623_v47 = vrot.slane %v2622_v10, 4  ;;  %v2790_v60 = vsel %vm5094_vm15, %v3906_v55, %v2789_v56  ;;  %v2797_v10 = vrot.slane %v5155_v57, 5  ;;  %v3112_v55 = vshll.u32 %v3044_v52, 16  ;;  %v3050_v56 = vld [vmem:[#allocation2 + $0x48] sm:$0xf] }
 0x1b3   : > { %4184 = vmatmul.mubr.msk.bf16.gmra.mrb[0].mxu1 %vm2068_vm12, %v3865_v58  ;;  %v2593_v58 = vrot.slane %v2591_v8, 5  ;;  %v2585_v8 = vrot.slane %v2583_v21, 5  ;;  %v2801_v21 = vrot.slane %v5166_v14, 5  ;;  %v2813_v14 = vrot.slane %v5175_v42, 5 }
 0x1b4   : > { %4189 = vmatprep.mubr.msk.bf16.mxu1 %vm2068_vm12, %v3879_v20  ;;  %v2555_v20 = vshll.u32 %v5144_v45, 16  ;;  %v3056_v42 = vshll.u32 %v3036_v35, 16 }
 0x1b5   : > { %v2594_v46 = vor.u32 %v2593_v58, %v2590_v27  ;;  %v2639_v58 = vshll.u32 %v5181_v7, 16 }
 0x1b6   : > { %v2557_v9 = vrot.slane %v2555_v20, 5  ;;  %v2759_v20 = vld [vmem:[#allocation2 + $0x8] sm:$0xe] }
 0x1b7   : > { %v2595_v26 = vrot.slane %v2594_v46, 4  ;;  %v3905_v62 = vrot.slane %v2759_v20, 9  ;;  %v2764_v46 = vld [vmem:[#allocation2 + $0x30] sm:$0xe] }
 0x1b8   : > { %v2558_v61 = vsel %vm4720_vm4, %v2553_v0, %v2557_v9  ;;  %v2785_v0 = vrot.slane %v5144_v45, 5  ;;  %v2761_v9 = vld [vmem:[#allocation2 + $0x18] sm:$0xe] }
 0x1b9   : > { %v3907_v17 = vrot.slane %v2761_v9, 9 }
 0x1bb   : > { %4190 = vmatmul.mubr.msk.bf16.vlgmr.msra.gmra.mrb[4].mxu1 %vm2068_vm12, %v3880_v3  ;;  %v5161_v3 = vld [vmem:[#allocation2 + $0x34] sm:$0x1] }
 0x1bc   : > { %4198 = vmatpush3.bf16.msra.mxu1 %v2454_v4  ;;  %4193 = vmatprep.mubr.msk.bf16.mxu1 %vm2068_vm12, %v3881_v41  ;;  %v2644_v4 = vshrl.u32 %v2543_v19, 16  ;;  %v2572_v41 = vsel %vm4720_vm4, %v2567_v30, %v2571_v1  ;;  %v2625_v24 = vshll.u32 %v5161_v3, 16  ;;  %v3922_v30 = vld [vmem:[%s5416_s3 + $0x18] sm:$0xf]  ;;  %v2641_v1 = vrot.slane %v2639_v58, 5 }
 0x1bd   : > { %4427 = vmatprep.subr.msk.bf16.mxu1 %vm2081_vm7, %v3896_v13  ;;  %v2597_v13 = vshll.u32 %v5155_v57, 16  ;;  %v2805_v15 = vrot.slane %v5161_v3, 5  ;;  %v2961_v3 = vsel %vm2081_vm7, %v3922_v30, 0 }
 0x1be   : > { %v2646_v28 = vrot.slane %v2644_v4, 4  ;;  %v2627_v39 = vrot.slane %v2625_v24, 5  ;;  %v2766_v24 = vld [vmem:[#allocation2 + $0x40] sm:$0xe] }
 0x1bf   : > { %v3912_v5 = vrot.slane %v2766_v24, 9 }
 0x1c0   : > { %v2628_v6 = vsel %vm4720_vm4, %v2623_v47, %v2627_v39  ;;  %v3931_v47 = vld [vmem:[%s5416_s3 + $0x1c] sm:$0xf]  ;;  %v3053_v39 = vshrl.u32 %v3036_v35, 16 }
 0x1c1   : > { %v3899_v27 = vcombine.low %v2614_v38, %v2628_v6  ;;  %v2814_v36 = vsel %vm5094_vm15, %v3912_v5, %v2813_v14  ;;  %v4508_v6 = vld [vmem:[#allocation2 + $0x10] ss:$8 sps:$4 sm:$0xff]   ;;  %v5236_v38 = vld [vmem:[#allocation2 + $0x14] sm:$0x1]  ;;  %v5261_v35 = vld [vmem:[#allocation2 + $0x3c] sm:$0x1] }
 0x1c3   : > { %4194 = vmatmul.mubr.msk.bf16.gmra.mrb[0].mxu1 %vm2068_vm12, %v3882_v25  ;;  %v3897_v25 = vcombine.low %v2558_v61, %v2572_v41  ;;  %v3908_v41 = vrot.slane %v2762_v11, 9  ;;  %v3909_v61 = vrot.slane %v2763_v12, 9  ;;  %v3114_v12 = vrot.slane %v3112_v55, 5 }
 0x1c4   : > { %4199 = vmatprep.mubr.msk.bf16.mxu1 %vm2068_vm12, %v4504_v29  ;;  %v2649_v29 = vrot.slane %v2647_v23, 5  ;;  %v2786_v23 = vsel %vm5094_vm15, %v3905_v62, %v2785_v0 }
 0x1c5   : > { %v3914_v45 = vcombine.low %v2786_v23, %v2790_v60  ;;  %v2798_v22 = vsel %vm5094_vm15, %v3908_v41, %v2797_v10 }
 0x1cb   : > { %4200 = vmatmul.mubr.msk.bf16.vlgmr.msra.gmra.mrb[4].mxu1 %vm2068_vm12, %v4505_v44  ;;  %v2650_v44 = vor.u32 %v2649_v29, %v2646_v28  ;;  %v2802_v28 = vsel %vm5094_vm15, %v3909_v61, %v2801_v21  ;;  %v3154_v61 = vshll.u32 %v3050_v56, 16 }
 0x1cc   : > { %4208 = vmatpush3.bf16.msra.mxu1 %v2684_v33  ;;  %4203 = vmatprep.mubr.msk.bf16.mxu1 %vm2068_vm12, %v4506_v54  ;;  %v2599_v33 = vrot.slane %v2597_v13, 5  ;;  %v2586_v54 = vsel %vm4720_vm4, %v2581_v32, %v2585_v8  ;;  %v3910_v13 = vrot.slane %v2764_v46, 9  ;;  %v4510_v46 = vld [vmem:[#allocation2 + $0x30] ss:$8 sps:$4 sm:$0xff]  }
 0x1cd   : > { %4428 = vmatprep.subr.msk.bf16.mxu1 %vm2081_vm7, %v5149_v50  ;;  %v2651_v19 = vrot.slane %v2650_v44, 4  ;;  %v2637_v50 = vrot.slane %v2636_v51, 4  ;;  %v3067_v44 = vshrl.u32 %v3038_v37, 16  ;;  %v3042_v51 = vld [vmem:[#allocation2 + $0x28] sm:$0xf]  ;;  %v3156_v37 = vrot.slane %v3154_v61, 5 }
 0x1ce   : > { %v2600_v43 = vsel %vm4720_vm4, %v2595_v26, %v2599_v33  ;;  %v2806_v57 = vsel %vm5094_vm15, %v3910_v13, %v2805_v15  ;;  %v2809_v33 = vrot.slane %v5181_v7, 5  ;;  %v3058_v7 = vrot.slane %v3056_v42, 5  ;;  %v3048_v13 = vld [vmem:[#allocation2 + $0x40] sm:$0xf] }
 0x1cf   : > { %v3898_v63 = vcombine.low %v2586_v54, %v2600_v43  ;;  %v2656_v31 = vsel %vm4720_vm4, %v2651_v19, %v2655_v59  ;;  %v2642_v34 = vsel %vm4720_vm4, %v2637_v50, %v2641_v1  ;;  %v3916_v29 = vcombine.low %v2802_v28, %v2806_v57  ;;  %v3046_v19 = vld [vmem:[#allocation2 + $0x38] sm:$0xf]  ;;  %v5239_v59 = vld [vmem:[#allocation2 + $0x1c] sm:$0x1]  ;;  %v4509_v1 = vld [vmem:[#allocation2 + $0x20] ss:$8 sps:$4 sm:$0xff]  }
 0x1d0   : > { %v3900_v4 = vcombine.low %v2642_v34, %v2656_v31  ;;  %v3055_v54 = vrot.slane %v3053_v39, 4  ;;  %v3069_v53 = vrot.slane %v3067_v44, 4  ;;  %v3098_v58 = vshll.u32 %v3042_v51, 16  ;;  %v5252_v57 = vld [vmem:[#allocation2 + $0x2c] sm:$0x1] }
 0x1d1   : > { %v3191_v50 = vsel %vm2081_vm7, %v3931_v47, 0  ;;  %v3062_v31 = vshll.u32 %v5236_v38, 16  ;;  %v3123_v11 = vshrl.u32 %v3046_v19, 16  ;;  %v3126_v34 = vshll.u32 %v3046_v19, 16  ;;  %v5256_v28 = vld [vmem:[#allocation2 + $0x34] sm:$0x1] }
 0x1d2   : > { %v3059_v20 = vor.u32 %v3058_v7, %v3055_v54  ;;  %v3100_v9 = vrot.slane %v3098_v58, 5  ;;  %v3076_v41 = vshll.u32 %v5239_v59, 16  ;;  %v4511_v39 = vld [vmem:[#allocation2 + $0x40] ss:$8 sps:$4 sm:$0xff]   ;;  %v5270_v58 = vld [vmem:[#allocation2 + $0x44] sm:$0x1] }
 0x1d3   : > { %4204 = vmatmul.mubr.msk.bf16.gmra.mrb[0].mxu1 %vm2068_vm12, %v4507_v18  ;;  %v2793_v18 = vrot.slane %v5159_v2, 5  ;;  %v2765_v2 = vld [vmem:[#allocation2 + $0x38] sm:$0xe]  ;;  %v3064_v21 = vrot.slane %v3062_v31, 5  ;;  %v3125_v24 = vrot.slane %v3123_v11, 4  ;;  %v3146_v31 = vshll.u32 %v5270_v58, 16 }
 0x1d4   : > { %4209 = vmatprep.mubr.msk.bf16.mxu1 %vm2068_vm12, %v3897_v25  ;;  %v3911_v32 = vrot.slane %v2765_v2, 9  ;;  %v3137_v2 = vshrl.u32 %v3048_v13, 16  ;;  %v3078_v14 = vrot.slane %v3076_v41, 5  ;;  %v5272_v19 = vld [vmem:[#allocation2 + $0x4c] sm:$0x1]  ;;  %v3308_v40 = vrot.slane %v5256_v28, 5 }
 0x1d5   : > { %v2794_v25 = vsel %vm5094_vm15, %v3907_v17, %v2793_v18  ;;  %v3151_v18 = vshrl.u32 %v3050_v56, 16 }
 0x1d6   : > { %v3915_v26 = vcombine.low %v2794_v25, %v2798_v22  ;;  %v2810_v8 = vsel %vm5094_vm15, %v3911_v32, %v2809_v33  ;;  %v3128_v25 = vrot.slane %v3126_v34, 5  ;;  %v3104_v33 = vshll.u32 %v5252_v57, 16 }
 0x1d7   : > { %v3917_v43 = vcombine.low %v2810_v8, %v2814_v36  ;;  %v3153_v36 = vrot.slane %v3151_v18, 4  ;;  %v3139_v54 = vrot.slane %v3137_v2, 4  ;;  %v3296_v18 = vrot.slane %v5239_v59, 5  ;;  %v3268_v2 = vld [vmem:[#allocation2 + $0x20] sm:$0xe] }
 0x1d8   : > { %v3129_v44 = vor.u32 %v3128_v25, %v3125_v24  ;;  %v3269_v24 = vld [vmem:[#allocation2 + $0x28] sm:$0xe] }
 0x1d9   : > { %v3943_v59 = vrot.slane %v3269_v24, 9 }
 0x1db   : > { %4210 = vmatmul.mubr.msk.bf16.vlgmr.msra.gmra.mrb[4].mxu1 %vm2068_vm12, %v3898_v63  ;;  %v3072_v63 = vrot.slane %v3070_v48, 5 }
 0x1dc   : > { %4218 = vmatpush3.bf16.msra.mxu1 %v2842_v16  ;;  %4213 = vmatprep.mubr.msk.bf16.mxu1 %vm2068_vm12, %v3899_v27  ;;  %v3040_v16 = vld [vmem:[#allocation2 + $0x20] sm:$0xf]  ;;  %v3095_v27 = vshrl.u32 %v3042_v51, 16 }
 0x1dd   : > { %4429 = vmatprep.subr.msk.bf16.mxu1 %vm2081_vm7, %v3922_v30  ;;  %v3109_v30 = vshrl.u32 %v3044_v52, 16  ;;  %v3081_v62 = vshrl.u32 %v3040_v16, 16  ;;  %v3084_v0 = vshll.u32 %v3040_v16, 16  ;;  %v3073_v60 = vor.u32 %v3072_v63, %v3069_v53 }
 0x1de   : > { %v3097_v23 = vrot.slane %v3095_v27, 4  ;;  %v3132_v52 = vshll.u32 %v5261_v35, 16  ;;  %v3106_v63 = vrot.slane %v3104_v33, 5  ;;  %v3130_v27 = vrot.slane %v3129_v44, 4 }
 0x1df   : > { %v3111_v10 = vrot.slane %v3109_v30, 4  ;;  %v3083_v15 = vrot.slane %v3081_v62, 4  ;;  %v3086_v17 = vrot.slane %v3084_v0, 5  ;;  %v3074_v22 = vrot.slane %v3073_v60, 4  ;;  %v3266_v60 = vld [vmem:[#allocation2 + $0x10] sm:$0xe] }
 0x1e0   : > { %v3134_v0 = vrot.slane %v3132_v52, 5 }
 0x1e1   : > { %v3087_v32 = vor.u32 %v3086_v17, %v3083_v15  ;;  %v3079_v42 = vsel %vm4720_vm4, %v3074_v22, %v3078_v14  ;;  %v3292_v15 = vrot.slane %v5236_v38, 5  ;;  %v3270_v38 = vld [vmem:[#allocation2 + $0x30] sm:$0xe]  ;;  %v3271_v14 = vld [vmem:[#allocation2 + $0x38] sm:$0xe] }
 0x1e3   : > { %4214 = vmatmul.mubr.msk.bf16.gmra.mrb[0].mxu1 %vm2068_vm12, %v3900_v4  ;;  %v5245_v4 = vld [vmem:[%s5416_s3 + $0x20] sm:$0xf]  ;;  %v3088_v53 = vrot.slane %v3087_v32, 4  ;;  %v3942_v32 = vrot.slane %v3268_v2, 9 }
 0x1e4   : > { %4219 = vmatprep.mubr.msk.bf16.mxu1 %vm2068_vm12, %v3914_v45  ;;  %v3060_v45 = vrot.slane %v3059_v20, 4  ;;  %v3157_v20 = vor.u32 %v3156_v37, %v3153_v36  ;;  %v3349_v34 = vsel %vm2081_vm7, %v5245_v4, 0  ;;  %v3945_v36 = vrot.slane %v3271_v14, 9 }
 0x1e5   : > { %v3312_v37 = vrot.slane %v5261_v35, 5 }
 0x1e6   : > { %v3065_v5 = vsel %vm4720_vm4, %v3060_v45, %v3064_v21 }
 0x1e7   : > { %v3932_v48 = vcombine.low %v3065_v5, %v3079_v42  ;;  %v3304_v5 = vrot.slane %v5252_v57, 5  ;;  %v3273_v42 = vld [vmem:[#allocation2 + $0x48] sm:$0xe] }
 0x1e8   : > { %v3947_v35 = vrot.slane %v3273_v42, 9 }
 0x1eb   : > { %4220 = vmatmul.mubr.msk.bf16.vlgmr.msra.gmra.mrb[4].mxu1 %vm2068_vm12, %v3915_v26  ;;  %v5254_v26 = vld [vmem:[#allocation2 + $0x24] sm:$0x1] }
 0x1ec   : > { %4228 = vmatpush3.bf16.msra.mxu1 %v2961_v3  ;;  %4223 = vmatprep.mubr.msk.bf16.mxu1 %vm2068_vm12, %v3916_v29  ;;  %v3101_v3 = vor.u32 %v3100_v9, %v3097_v23  ;;  %v3140_v29 = vshll.u32 %v3048_v13, 16  ;;  %v3090_v8 = vshll.u32 %v5254_v26, 16  ;;  %v3158_v23 = vrot.slane %v3157_v20, 4 }
 0x1ed   : > { %4430 = vmatprep.subr.msk.bf16.mxu1 %vm2081_vm7, %v3931_v47  ;;  %v3115_v47 = vor.u32 %v3114_v12, %v3111_v10  ;;  %v3267_v10 = vld [vmem:[#allocation2 + $0x18] sm:$0xe]  ;;  %v3447_v12 = vld [vmem:[%s5419_s6] sm:$0x3]  ;;  %v3940_v13 = vrot.slane %v3266_v60, 9  ;;  %v3300_v33 = vrot.slane %v5254_v26, 5  ;;  %v3313_v26 = vsel %vm5094_vm15, %v3945_v36, %v3312_v37 }
 0x1ee   : > { %v3142_v7 = vrot.slane %v3140_v29, 5  ;;  %v3092_v30 = vrot.slane %v3090_v8, 5  ;;  %v3941_v17 = vrot.slane %v3267_v10, 9  ;;  %v3272_v8 = vld [vmem:[#allocation2 + $0x40] sm:$0xe]  ;;  %v3481_v44 = vsel %vm383_vm0, %v3447_v12, 0 }
 0x1ef   : > { %v3116_v51 = vrot.slane %v3115_v47, 4  ;;  %v3293_v22 = vsel %vm5094_vm15, %v3940_v13, %v3292_v15  ;;  %v3944_v47 = vrot.slane %v3270_v38, 9 }
 0x1f0   : > { %v3143_v56 = vor.u32 %v3142_v7, %v3139_v54  ;;  %v3316_v54 = vrot.slane %v5270_v58, 5  ;;  %v3320_v7 = vrot.slane %v5272_v19, 5  ;;  %v4515_v58 = vld [vmem:[%s5142_s17 + $0x18] sm:$0xff]  }
 0x1f1   : > { %v3309_v57 = vsel %vm5094_vm15, %v3944_v47, %v3308_v40 }
 0x1f2   : > { %v3144_v45 = vrot.slane %v3143_v56, 4  ;;  %v3321_v52 = vsel %vm5094_vm15, %v3947_v35, %v3320_v7 }
 0x1f3   : > { %4224 = vmatmul.mubr.msk.bf16.gmra.mrb[0].mxu1 %vm2068_vm12, %v3917_v43  ;;  %v3118_v43 = vshll.u32 %v5256_v28, 16  ;;  %v3301_v28 = vsel %vm5094_vm15, %v3942_v32, %v3300_v33 }
 0x1f4   : > { %4229 = vmatprep.mubr.msk.bf16.mxu1 %vm2068_vm12, %v4508_v6  ;;  %v3102_v6 = vrot.slane %v3101_v3, 4  ;;  %v3297_v3 = vsel %vm5094_vm15, %v3941_v17, %v3296_v18 }
 0x1f5   : > { %v3120_v16 = vrot.slane %v3118_v43, 5  ;;  %v3949_v29 = vcombine.low %v3293_v22, %v3297_v3 }
 0x1f6   : > { %v3107_v55 = vsel %vm4720_vm4, %v3102_v6, %v3106_v63  ;;  %v3946_v6 = vrot.slane %v3272_v8, 9 }
 0x1f7   : > { %v3121_v62 = vsel %vm4720_vm4, %v3116_v51, %v3120_v16  ;;  %v4513_v16 = vld [vmem:[%s5142_s17 + $0x8] sm:$0xff]  }
 0x1f8   : > { %v3317_v51 = vsel %vm5094_vm15, %v3946_v6, %v3316_v54 }
 0x1f9   : > { %v3952_v63 = vcombine.low %v3317_v51, %v3321_v52 }
 0x1fb   : > { %4230 = vmatmul.mubr.msk.bf16.vlgmr.msra.gmra.mrb[4].mxu1 %vm2068_vm12, %v4509_v1  ;;  %v3093_v1 = vsel %vm4720_vm4, %v3088_v53, %v3092_v30  ;;  %v4512_v53 = vld [vmem:[%s5142_s17] sm:$0xff]  }
 0x1fc   : > { %4238 = vmatpush3.bf16.msra.mxu1 %v3191_v50  ;;  %4233 = vmatprep.mubr.msk.bf16.mxu1 %vm2068_vm12, %v4510_v46  ;;  %v3160_v50 = vshll.u32 %v5272_v19, 16  ;;  %v3933_v11 = vcombine.low %v3093_v1, %v3107_v55  ;;  %v3135_v46 = vsel %vm4720_vm4, %v3130_v27, %v3134_v0  ;;  %v4514_v27 = vld [vmem:[%s5142_s17 + $0x10] sm:$0xff]   ;;  %v3957_v55 = vld [vmem:[%s5417_s4] ss:$0 sm:$0xff]  ;;  %s3687_s17 = sshll.u32 %s314_s18, 5 }
 0x1fd   : > { %4431 = vmatprep.subr.msk.bf16.mxu1 %vm2081_vm7, %v5245_v4  ;;  %v3934_v9 = vcombine.low %v3121_v62, %v3135_v46  ;;  %v3148_v4 = vrot.slane %v3146_v31, 5  ;;  %v3966_v0 = vld [vmem:[%s5420_s7] ss:$0 sm:$0xff]  ;;  %s5343_s21 = scalar_lea.vmem [#allocation3], %s3687_s17 }
 0x1fe   : > { %v3162_v41 = vrot.slane %v3160_v50, 5  ;;  %s3609_s23 = sshll.u32 %s5343_s21, 4  ;;  %s5362_s23 = int_to_ptr.vmem [resolvable:$true] %s3609_s23 }
 0x1ff   : > { %v3149_v61 = vsel %vm4720_vm4, %v3144_v45, %v3148_v4  ;;  %s4516_s25 = scalar_lea.vmem %s5362_s23, 512  ;;  %p4523_p1 = scmp.lt.s32.totalorder %s5362_s23, %s4521_s13 }
 0x200   : > { %v3163_v21 = vsel %vm4720_vm4, %v3158_v23, %v3162_v41  ;;  %p4517_p12 = scmp.ne.s32.totalorder %s5362_s23, %s4516_s25  ;;  %p4524_p2 = scmp.lt.s32.totalorder %s4522_s19, %s4516_s25 }
 0x201   : > { %v3935_v25 = vcombine.low %v3149_v61, %v3163_v21 }
 0x202   : > { %p4518_p13 = pnand %p4517_p12, %p4667_p5  ;;  %p4525_p3 = por %p4524_p2, %p4523_p1 }
 0x203   : > { %4234 = vmatmul.mubr.msk.bf16.gmra.mrb[0].mxu1 %vm2068_vm12, %v4511_v39  ;;  %v3305_v39 = vsel %vm5094_vm15, %v3943_v59, %v3304_v5 }
 0x204   : > { %4239 = vmatprep.mubr.msk.bf16.mxu1 %vm2068_vm12, %v3932_v48  ;;  %v3950_v43 = vcombine.low %v3301_v28, %v3305_v39  ;;  %v3951_v48 = vcombine.low %v3309_v57, %v3313_v26  ;;  %p4519_p0 = pneg %p4518_p13 }
 0x206   : > { %p4526_p4 = pnand %p4525_p3, %p4519_p0 }
 0x20b   : > { %4240 = vmatmul.mubr.msk.bf16.vlgmr.msra.gmra.mrb[4].mxu1 %vm2068_vm12, %v3933_v11 }
 0x20c   : > { %4248 = vmatpush3.bf16.msra.mxu1 %v3349_v34  ;;  %4243 = vmatprep.mubr.msk.bf16.mxu1 %vm2068_vm12, %v3934_v9 }
 0x20d   : > { %4432 = vmatprep.subr.msk.bf16.mxu1 %vm383_vm0, %v3447_v12 }
 0x213   : > { %4244 = vmatmul.mubr.msk.bf16.gmra.mrb[0].mxu1 %vm2068_vm12, %v3935_v25 }
 0x214   : > { %4249 = vmatprep.mubr.msk.bf16.mxu1 %vm2068_vm12, %v3949_v29 }
 0x21b   : > { %4250 = vmatmul.mubr.msk.bf16.vlgmr.msra.gmra.mrb[4].mxu1 %vm2068_vm12, %v3950_v43 }
 0x21c   : > { %4258 = vmatpush3.bf16.msra.mxu1 %v3481_v44  ;;  %4253 = vmatprep.mubr.msk.bf16.mxu1 %vm2068_vm12, %v3951_v48 }
 0x223   : > { %4254 = vmatmul.mubr.msk.bf16.gmra.mrb[0].mxu1 %vm2068_vm12, %v3952_v63 }
 0x224   : > { %4259 = vmatprep.mubr.msk.bf16.mxu1 %vm370_vm1, %v4512_v53 }
 0x22b   : > { %4260 = vmatmul.mubr.msk.bf16.vlgmr.msra.gmra.mrb[4].mxu1 %vm370_vm1, %v4513_v16 }
 0x22c   : > { %4263 = vmatprep.mubr.msk.bf16.mxu1 %vm370_vm1, %v4514_v27 }
 0x233   : > { %4264 = vmatmul.mubr.msk.bf16.gmra.mrb[0].mxu1 %vm370_vm1, %v4515_v58 }
 0x26c   : > { %v4171_v19 = vpop.f32.mrb[8].mxu0 }
 0x26d   : > { %v2119_v49 = vpop.f32.mrb[9].mxu0  ;;  %v4269_v56 = vadd.f32 %v4171_v19, %v3957_v55 }
 0x26e   : > { %v4172_v20 = vpop.f32.mrb[10].mxu0  ;;  %v4271_v50 = vadd.f32 %v3957_v55, %v2119_v49 }
 0x26f   : > { %v2122_v30 = vpop.f32.mrb[11].mxu0  ;;  %v4273_v1 = vadd.f32 %v4172_v20, %v3957_v55 }
 0x270   : > { %v4275_v11 = vadd.f32 %v3957_v55, %v2122_v30 }
 0x2fe   : > { %v4261_v62 = vpop.f32.mrb[4].mxu1 }
 0x2ff   : > { %v4270_v31 = vadd.f32 %v4269_v56, %v4261_v62  ;;  %v3517_v60 = vpop.f32.mrb[5].mxu1 }
 0x300   : > { %v4272_v34 = vadd.f32 %v4271_v50, %v3517_v60  ;;  %v4262_v46 = vpop.f32.mrb[6].mxu1 }
 0x301   : > { %v3565_v23 = vadd.f32 %v4270_v31, %v3966_v0  ;;  %v4274_v9 = vadd.f32 %v4273_v1, %v4262_v46  ;;  %v3520_v45 = vpop.f32.mrb[7].mxu1 }
 0x302   : > { %v3563_v41 = vadd.f32 %v4272_v34, %v3966_v0  ;;  %v4276_v10 = vadd.f32 %v4275_v11, %v3520_v45 }
 0x303   : > { %v3573_v12 = vmax.f32 %v3565_v23, 0.0  ;;  %v3566_v13 = vadd.f32 %v4274_v9, %v3966_v0 }
 0x304   : > { %v3571_v15 = vmax.f32 %v3563_v41, 0.0  ;;  %v3564_v4 = vadd.f32 %v4276_v10, %v3966_v0 }
 0x305   : > { %v3581_v17 = vpack.c.bf16 %v3573_v12, %v3573_v12  ;;  %v3574_v18 = vmax.f32 %v3566_v13, 0.0 }
 0x306   : > { %v3579_v61 = vpack.c.bf16 %v3571_v15, %v3571_v15  ;;  %v3572_v21 = vmax.f32 %v3564_v4, 0.0  ;;  %v4265_v22 = vpop.f32.mrb[0].mxu1 }
 0x307   : > { %3589 = vst.msk [vmem:[%s5343_s21 + $0x8] sm:$0xf] %vm1748_vm5, %v3581_v17  ;;  %v3582_v24 = vpack.c.bf16 %v3574_v18, %v3574_v18  ;;  %v4277_v38 = vadd.f32 %v4265_v22, %v3957_v55  ;;  %v3533_v25 = vpop.f32.mrb[1].mxu1 }
 0x308   : > { %3587 = vst.msk [vmem:[%s5343_s21] sm:$0xf] %vm1748_vm5, %v3579_v61  ;;  %v3580_v3 = vpack.c.bf16 %v3572_v21, %v3572_v21  ;;  %v4278_v2 = vadd.f32 %v3957_v55, %v3533_v25  ;;  %v4266_v29 = vpop.f32.mrb[2].mxu1 }
 0x309   : > { %3590 = vst.msk [vmem:[%s5343_s21 + $0xc] sm:$0xf] %vm1748_vm5, %v3582_v24  ;;  %v3569_v59 = vadd.f32 %v4277_v38, %v3966_v0  ;;  %v4279_v5 = vadd.f32 %v4266_v29, %v3957_v55  ;;  %v3536_v14 = vpop.f32.mrb[3].mxu1 }
 0x30a   : > { %3588 = vst.msk [vmem:[%s5343_s21 + $0x4] sm:$0xf] %vm1748_vm5, %v3580_v3  ;;  %v3567_v47 = vadd.f32 %v4278_v2, %v3966_v0  ;;  %v4280_v40 = vadd.f32 %v3957_v55, %v3536_v14 }
 0x30b   : > { %v3577_v32 = vmax.f32 %v3569_v59, 0.0  ;;  %v3570_v33 = vadd.f32 %v4279_v5, %v3966_v0 }
 0x30c   : > { %v3575_v36 = vmax.f32 %v3567_v47, 0.0  ;;  %v3568_v37 = vadd.f32 %v4280_v40, %v3966_v0 }
 0x30d   : > { %v3585_v39 = vpack.c.bf16 %v3577_v32, %v3577_v32  ;;  %v3578_v42 = vmax.f32 %v3570_v33, 0.0 }
 0x30e   : > { %v3583_v57 = vpack.c.bf16 %v3575_v36, %v3575_v36  ;;  %v3576_v8 = vmax.f32 %v3568_v37, 0.0 }
 0x30f   : > { %3593 = vst.msk [vmem:[%s5343_s21 + $0x18] sm:$0xf] %vm1748_vm5, %v3585_v39  ;;  %v3586_v28 = vpack.c.bf16 %v3578_v42, %v3578_v42 }
 0x310   : > { %3591 = vst.msk [vmem:[%s5343_s21 + $0x10] sm:$0xf] %vm1748_vm5, %v3583_v57  ;;  %v3584_v43 = vpack.c.bf16 %v3576_v8, %v3576_v8 }
 0x311   : > { %3594 = vst.msk [vmem:[%s5343_s21 + $0x1c] sm:$0xf] %vm1748_vm5, %v3586_v28 }
 0x312   : > { %3592 = vst.msk [vmem:[%s5343_s21 + $0x14] sm:$0xf] %vm1748_vm5, %v3584_v43 }
 0x313   : > { %4529 = shalt.err (!%p4526_p4)
}
 0x314   : > { %s4530_s18 = scalar_lea.hbm %s5360_s10, 512  ;;  %s4534_s21 = scalar_lea.hbm %s5421_s8, 1024 }
 0x315   : > { %p4531_p7 = scmp.ne.s32.totalorder %s5360_s10, %s4530_s18  ;;  %p4535_p10 = scmp.lt.u32.totalorder %s5360_s10, %s5421_s8 }
 0x316   : > { %p4536_p11 = scmp.lt.u32.totalorder %s4534_s21, %s4530_s18  ;;  %p4538_p13 = scmp.lt.u32.totalorder %s4530_s18, %s5360_s10 }
 0x317   : > { %p4532_p8 = pnand %p4531_p7, %p4667_p5 }
 0x318   : > { %p4537_p12 = por %p4536_p11, %p4535_p10 }
 0x319   : > { %p4533_p9 = pneg %p4532_p8 }
 0x31a   : > { %p4539_p0 = por %p4538_p13, %p4537_p12 }
 0x31c   : > { %p4540_p1 = pnand %p4539_p0, %p4533_p9 }
 0x31e   : > { %4543 = shalt.err (!%p4540_p1)
}
 0x31f   : > { %s4582_s26 = smov 64   ;;  %s4583_s25 = smov 4  }
 0x320   : > { %4434 = dma.vmem_to_hbm [thread:$0]  (%p4667_p5), %s5362_s23, 512, %s5360_s10, %s5372_s9, %s4582_s26, %s4582_s26, %s4583_s25  }
 0x321 PF: > { %p4440_p2 = scmp.ge.s32.totalorder %s4578_s30, 2  ;;  %s3624_s12 = sand.u32 1, %s4566_s27  }
 0x322   : > { %s3625_s13 = scalar_lea.sflag [#allocation4], %s3624_s12 }
 0x323   : > { %p4437_p3 = pnand %p4440_p2, %p4671_p6 }
 0x325   : > { %4561 = dma.done.wait (!%p4437_p3), %s3625_s13, 512  }
 0x326   : > { %4563 = vsyncadd (!%p4437_p3), %s3625_s13, 4294966784  ;;  %p18_p4 = scmp.ge.s32.totalorder %s4654_s11, 4   ;;  %s5432_s27 = smov %s4570_s28 }
 0x327   : > { %s5433_s28 = smov %s4574_s29  ;;  %s5434_s29 = smov %s4665_s14 }
 0x328   : > { %s5435_s30 = smov %s4654_s11  ;;  %20 = sbr.rel (!%p18_p4) target bundleno = 3 (0x3), region = 113 }
 0x32f   :  { %3630 = vsyncpa [#allocation4], 1 }
 0x330   :  { %3632 = vsyncpa [#allocation4 + $0x1], 1 }

</bundles_post_ra>
